<compile_context>
chip_gen: v7x
topology: tpu7x:2x2x1
jax: 0.10.0
libtpu: 0.0.40
codegen_flags: <defaults>
</compile_context>

<pallas_src>
import math
import jax
import jax.numpy as jnp
from jax.experimental import pallas as pl
from jax.experimental.pallas import tpu as pltpu

# ---------------- config (small, consistent with the module) ----------------
B = 2           # batch
S = 8           # sequence length
H = 32          # hidden size (stands in for 768)
NH = 4          # attention heads
DH = H // NH    # head dim
I = 64          # FFN intermediate size
L = 2           # encoder layers
V = 100         # vocab size
MAX_SEQUENCE_LENGTH = 108   # output dim of self.out (kept exactly)
OUT_PAD = 128               # lane-dense padded head width (sliced to 108)


# ------------------------------ fused kernel --------------------------------
def _bert_fused_kernel(emb_ref, amask_ref, eg_ref, eb_ref,
                       qkv_w_ref, qkv_b_ref, ao_w_ref, ao_b_ref,
                       ln1_g_ref, ln1_b_ref, w1_ref, b1_ref,
                       w2_ref, b2_ref, ln2_g_ref, ln2_b_ref,
                       out_w_ref, out_b_ref,
                       o_ref,
                       qkv_ref, ctx_ref):
    """One grid step == one batch element. Everything stays in VMEM."""

    def ln(x, g, b):
        # LayerNorm in f32 (VPU/EUP have no bf16 path on v5e).
        mu = jnp.mean(x, axis=-1, keepdims=True)
        var = jnp.mean(jnp.square(x - mu), axis=-1, keepdims=True)
        return (x - mu) * jax.lax.rsqrt(var + 1e-12) * g + b

    def mm(x, w):
        # bf16 MXU inputs, f32 accumulation.
        return jnp.dot(x.astype(jnp.bfloat16), w.astype(jnp.bfloat16),
                       preferred_element_type=jnp.float32)

    scale = 1.0 / math.sqrt(DH)
    inv_sqrt2 = 1.0 / math.sqrt(2.0)

    amask = amask_ref[0]                                  # [1, S] additive mask
    h = ln(emb_ref[0], eg_ref[...], eb_ref[...])          # [S, H] f32

    for l in range(L):
        # ---- fused QKV projection (one [H, 3H] matmul) ----
        qkv_ref[...] = mm(h, qkv_w_ref[l]) + qkv_b_ref[l]      # [S, 3H]

        # ---- per-head attention; heads are lane sub-ranges, no transposes ----
        for hh in range(NH):
            q = qkv_ref[:, hh * DH:(hh + 1) * DH]              # [S, DH]
            k = qkv_ref[:, H + hh * DH:H + (hh + 1) * DH]
            v = qkv_ref[:, 2 * H + hh * DH:2 * H + (hh + 1) * DH]
            s = jax.lax.dot_general(
                q.astype(jnp.bfloat16), k.astype(jnp.bfloat16),
                dimension_numbers=(((1,), (1,)), ((), ())),
                preferred_element_type=jnp.float32) * scale    # [S, S]
            s = s + amask                                      # HF additive mask
            s = s - jnp.max(s, axis=-1, keepdims=True)
            p = jnp.exp(s)
            p = p * pl.reciprocal(jnp.sum(p, axis=-1, keepdims=True),
                                  approx=True)
            ctx_ref[:, hh * DH:(hh + 1) * DH] = mm(p, v)       # [S, DH]

        # ---- attention output projection + residual + LN ----
        attn_out = mm(ctx_ref[...], ao_w_ref[l]) + ao_b_ref[l]
        h = ln(attn_out + h, ln1_g_ref[l], ln1_b_ref[l])

        # ---- FFN (GELU, exact erf) + residual + LN ----
        ff = mm(h, w1_ref[l]) + b1_ref[l]                      # [S, I]
        ff = 0.5 * ff * (1.0 + jax.lax.erf(ff * inv_sqrt2))
        ff = mm(ff, w2_ref[l]) + b2_ref[l]                     # [S, H]
        h = ln(ff + h, ln2_g_ref[l], ln2_b_ref[l])

    # ---- pooling + head (no lane-axis concat: split the matmul) ----
    apool = jnp.mean(h, axis=0, keepdims=True)                 # [1, H]
    mpool = jnp.max(h, axis=0, keepdims=True)                  # [1, H]
    # TODO(synk): nn.Dropout(0.3) is identity in eval mode; intentionally a no-op.
    logits = (mm(apool, out_w_ref[0:H, :])
              + mm(mpool, out_w_ref[H:2 * H, :])
              + out_b_ref[...])                                # [1, 128] lane-dense
    o_ref[0] = jax.nn.sigmoid(logits)


def _rep(shape):
    """Full-array block, same for every grid step (DMA'd into VMEM once)."""
    n = len(shape)
    return pl.BlockSpec(shape, lambda b, _n=n: (0,) * _n)


# ------------------------------ model assembly ------------------------------
def bert_base_uncased_forward(params, ids, mask, token_type_ids):
    # TODO(synk): word/position/type embedding gather is data-dependent and
    # stays in XLA glue; everything after it runs inside one Pallas kernel.
    pos = jnp.arange(S, dtype=jnp.int32)
    emb = (params["word_emb"][ids]
           + params["pos_emb"][pos][None, :, :]
           + params["type_emb"][token_type_ids])               # [B, S, H] f32

    # HuggingFace extended additive attention mask.
    amask = ((1.0 - mask.astype(jnp.float32)) * -10000.0).reshape(B, 1, S)

    lyr = params["layers"]
    bf16 = jnp.bfloat16
    # merged QKV weights / biases, stacked over layers
    qkv_w = jnp.stack([jnp.concatenate([p["q_w"], p["k_w"], p["v_w"]], axis=1)
                       for p in lyr]).astype(bf16)             # [L, H, 3H]
    qkv_b = jnp.stack([jnp.concatenate([p["q_b"], p["k_b"], p["v_b"]])[None, :]
                       for p in lyr])                          # [L, 1, 3H]
    ao_w = jnp.stack([p["ao_w"] for p in lyr]).astype(bf16)    # [L, H, H]
    ao_b = jnp.stack([p["ao_b"][None, :] for p in lyr])
    ln1_g = jnp.stack([p["ln1_g"][None, :] for p in lyr])
    ln1_b = jnp.stack([p["ln1_b"][None, :] for p in lyr])
    w1 = jnp.stack([p["w1"] for p in lyr]).astype(bf16)        # [L, H, I]
    b1 = jnp.stack([p["b1"][None, :] for p in lyr])
    w2 = jnp.stack([p["w2"] for p in lyr]).astype(bf16)        # [L, I, H]
    b2 = jnp.stack([p["b2"][None, :] for p in lyr])
    ln2_g = jnp.stack([p["ln2_g"][None, :] for p in lyr])
    ln2_b = jnp.stack([p["ln2_b"][None, :] for p in lyr])

    # lane-dense padded head weights (108 -> 128), sliced back after the kernel
    out_w = jnp.zeros((2 * H, OUT_PAD), jnp.float32)
    out_w = out_w.at[:, :MAX_SEQUENCE_LENGTH].set(params["out_w"]).astype(bf16)
    out_b = jnp.zeros((1, OUT_PAD), jnp.float32)
    out_b = out_b.at[:, :MAX_SEQUENCE_LENGTH].set(params["out_b"])

    eg = params["emb_ln_g"].reshape(1, H)
    eb = params["emb_ln_b"].reshape(1, H)

    out = pl.pallas_call(
        _bert_fused_kernel,
        out_shape=jax.ShapeDtypeStruct((B, 1, OUT_PAD), jnp.float32),
        grid=(B,),
        in_specs=[
            pl.BlockSpec((1, S, H), lambda b: (b, 0, 0)),      # emb
            pl.BlockSpec((1, 1, S), lambda b: (b, 0, 0)),      # additive mask
            _rep((1, H)), _rep((1, H)),                        # emb LN gamma/beta
            _rep((L, H, 3 * H)), _rep((L, 1, 3 * H)),          # qkv
            _rep((L, H, H)), _rep((L, 1, H)),                  # attn out proj
            _rep((L, 1, H)), _rep((L, 1, H)),                  # ln1
            _rep((L, H, I)), _rep((L, 1, I)),                  # ffn w1
            _rep((L, I, H)), _rep((L, 1, H)),                  # ffn w2
            _rep((L, 1, H)), _rep((L, 1, H)),                  # ln2
            _rep((2 * H, OUT_PAD)), _rep((1, OUT_PAD)),        # head
        ],
        out_specs=pl.BlockSpec((1, 1, OUT_PAD), lambda b: (b, 0, 0)),
        scratch_shapes=[
            pltpu.VMEM((S, 3 * H), jnp.float32),   # qkv buffer
            pltpu.VMEM((S, H), jnp.float32),       # attention context buffer
        ],
        compiler_params=pltpu.CompilerParams(
            dimension_semantics=("parallel",)),
    )(emb, amask, eg, eb, qkv_w, qkv_b, ao_w, ao_b,
      ln1_g, ln1_b, w1, b1, w2, b2, ln2_g, ln2_b, out_w, out_b)

    return out.reshape(B, OUT_PAD)[:, :MAX_SEQUENCE_LENGTH]    # [B, 108]


# ------------------------------ parameter init ------------------------------
def init_params(key):
    def nxt():
        nonlocal key
        key, sub = jax.random.split(key)
        return sub

    def normal(shape, scale=0.02):
        return (scale * jax.random.normal(nxt(), shape)).astype(jnp.float32)

    params = {
        "word_emb": normal((V, H)),
        "pos_emb": normal((S, H)),
        "type_emb": normal((2, H)),
        "emb_ln_g": jnp.ones((H,), jnp.float32),
        "emb_ln_b": jnp.zeros((H,), jnp.float32),
        "out_w": normal((2 * H, MAX_SEQUENCE_LENGTH)),
        "out_b": jnp.zeros((MAX_SEQUENCE_LENGTH,), jnp.float32),
        "layers": [],
    }
    for _ in range(L):
        params["layers"].append({
            "q_w": normal((H, H)), "q_b": jnp.zeros((H,), jnp.float32),
            "k_w": normal((H, H)), "k_b": jnp.zeros((H,), jnp.float32),
            "v_w": normal((H, H)), "v_b": jnp.zeros((H,), jnp.float32),
            "ao_w": normal((H, H)), "ao_b": jnp.zeros((H,), jnp.float32),
            "ln1_g": jnp.ones((H,), jnp.float32),
            "ln1_b": jnp.zeros((H,), jnp.float32),
            "w1": normal((H, I)), "b1": jnp.zeros((I,), jnp.float32),
            "w2": normal((I, H)), "b2": jnp.zeros((H,), jnp.float32),
            "ln2_g": jnp.ones((H,), jnp.float32),
            "ln2_b": jnp.zeros((H,), jnp.float32),
        })
    return params


# ----------------------------------- main -----------------------------------
if __name__ == "__main__":
    key = jax.random.PRNGKey(0)
    pkey, ikey = jax.random.split(key)

    params = init_params(pkey)

    ids = jax.random.randint(ikey, (B, S), 0, V, dtype=jnp.int32)
    mask = jnp.ones((B, S), dtype=jnp.int32)
    mask = mask.at[:, S - 2:].set(0)                 # pad the last 2 positions
    token_type_ids = jnp.zeros((B, S), dtype=jnp.int32)

    fwd = jax.jit(bert_base_uncased_forward)
    out = fwd(params, ids, mask, token_type_ids)
    out = jax.block_until_ready(out)

    assert out.shape == (B, MAX_SEQUENCE_LENGTH)
    assert bool(jnp.all(jnp.isfinite(out)))
    assert bool(jnp.all((out >= 0.0) & (out <= 1.0)))   # sigmoid range
    print("KERNEL_OK")
</pallas_src>

<mosaic_0001>
module attributes {stable_mosaic.version = 11 : i64} {
  func.func @_bert_fused_kernel(%arg0: i32, %arg1: memref<1x8x32xf32, #tpu.memory_space<vmem>>, %arg2: memref<1x1x8xf32, #tpu.memory_space<vmem>>, %arg3: memref<1x32xf32, #tpu.memory_space<vmem>>, %arg4: memref<1x32xf32, #tpu.memory_space<vmem>>, %arg5: memref<2x32x96xbf16, #tpu.memory_space<vmem>>, %arg6: memref<2x1x96xf32, #tpu.memory_space<vmem>>, %arg7: memref<2x32x32xbf16, #tpu.memory_space<vmem>>, %arg8: memref<2x1x32xf32, #tpu.memory_space<vmem>>, %arg9: memref<2x1x32xf32, #tpu.memory_space<vmem>>, %arg10: memref<2x1x32xf32, #tpu.memory_space<vmem>>, %arg11: memref<2x32x64xbf16, #tpu.memory_space<vmem>>, %arg12: memref<2x1x64xf32, #tpu.memory_space<vmem>>, %arg13: memref<2x64x32xbf16, #tpu.memory_space<vmem>>, %arg14: memref<2x1x32xf32, #tpu.memory_space<vmem>>, %arg15: memref<2x1x32xf32, #tpu.memory_space<vmem>>, %arg16: memref<2x1x32xf32, #tpu.memory_space<vmem>>, %arg17: memref<64x128xbf16, #tpu.memory_space<vmem>>, %arg18: memref<1x128xf32, #tpu.memory_space<vmem>>, %arg19: memref<1x1x128xf32, #tpu.memory_space<vmem>>, %arg20: memref<8x96xf32, #tpu.memory_space<vmem>>, %arg21: memref<8x32xf32, #tpu.memory_space<vmem>>) attributes {dimension_semantics = [#tpu.dimension_semantics<parallel>], iteration_bounds = array<i64: 2>, scalar_prefetch = 0 : i64, scratch_operands = 2 : i64, tpu.core_type = #tpu.core_type<tc>, window_params = [{transform_indices = @transform_0, window_bounds = array<i64: 1, 8, 32>}, {transform_indices = @transform_1, window_bounds = array<i64: 1, 1, 8>}, {pipeline_mode = #tpu.pipeline_mode<synchronous>, transform_indices = @transform_2, window_bounds = array<i64: 1, 32>}, {pipeline_mode = #tpu.pipeline_mode<synchronous>, transform_indices = @transform_3, window_bounds = array<i64: 1, 32>}, {pipeline_mode = #tpu.pipeline_mode<synchronous>, transform_indices = @transform_4, window_bounds = array<i64: 2, 32, 96>}, {pipeline_mode = #tpu.pipeline_mode<synchronous>, transform_indices = @transform_5, window_bounds = array<i64: 2, 1, 96>}, {pipeline_mode = #tpu.pipeline_mode<synchronous>, transform_indices = @transform_6, window_bounds = array<i64: 2, 32, 32>}, {pipeline_mode = #tpu.pipeline_mode<synchronous>, transform_indices = @transform_7, window_bounds = array<i64: 2, 1, 32>}, {pipeline_mode = #tpu.pipeline_mode<synchronous>, transform_indices = @transform_8, window_bounds = array<i64: 2, 1, 32>}, {pipeline_mode = #tpu.pipeline_mode<synchronous>, transform_indices = @transform_9, window_bounds = array<i64: 2, 1, 32>}, {pipeline_mode = #tpu.pipeline_mode<synchronous>, transform_indices = @transform_10, window_bounds = array<i64: 2, 32, 64>}, {pipeline_mode = #tpu.pipeline_mode<synchronous>, transform_indices = @transform_11, window_bounds = array<i64: 2, 1, 64>}, {pipeline_mode = #tpu.pipeline_mode<synchronous>, transform_indices = @transform_12, window_bounds = array<i64: 2, 64, 32>}, {pipeline_mode = #tpu.pipeline_mode<synchronous>, transform_indices = @transform_13, window_bounds = array<i64: 2, 1, 32>}, {pipeline_mode = #tpu.pipeline_mode<synchronous>, transform_indices = @transform_14, window_bounds = array<i64: 2, 1, 32>}, {pipeline_mode = #tpu.pipeline_mode<synchronous>, transform_indices = @transform_15, window_bounds = array<i64: 2, 1, 32>}, {pipeline_mode = #tpu.pipeline_mode<synchronous>, transform_indices = @transform_16, window_bounds = array<i64: 64, 128>}, {pipeline_mode = #tpu.pipeline_mode<synchronous>, transform_indices = @transform_17, window_bounds = array<i64: 1, 128>}, {transform_indices = @transform_18, window_bounds = array<i64: 1, 1, 128>}]} {
    %c0 = arith.constant 0 : index
    %c0_0 = arith.constant 0 : index
    %c0_1 = arith.constant 0 : index
    %0 = vector.load %arg2[%c0, %c0_0, %c0_1] : memref<1x1x8xf32, #tpu.memory_space<vmem>>, vector<1x1x8xf32>
    %1 = vector.shape_cast %0 : vector<1x1x8xf32> to vector<1x8xf32>
    %c0_2 = arith.constant 0 : index
    %c0_3 = arith.constant 0 : index
    %c0_4 = arith.constant 0 : index
    %2 = vector.load %arg1[%c0_2, %c0_3, %c0_4] : memref<1x8x32xf32, #tpu.memory_space<vmem>>, vector<1x8x32xf32>
    %3 = vector.shape_cast %2 : vector<1x8x32xf32> to vector<8x32xf32>
    %c0_5 = arith.constant 0 : index
    %c0_6 = arith.constant 0 : index
    %4 = vector.load %arg3[%c0_5, %c0_6] : memref<1x32xf32, #tpu.memory_space<vmem>>, vector<1x32xf32>
    %c0_7 = arith.constant 0 : index
    %c0_8 = arith.constant 0 : index
    %5 = vector.load %arg4[%c0_7, %c0_8] : memref<1x32xf32, #tpu.memory_space<vmem>>, vector<1x32xf32>
    %cst = arith.constant dense<0.000000e+00> : vector<8xf32>
    %6 = vector.multi_reduction <add>, %3, %cst [1] : vector<8x32xf32> to vector<8xf32>
    %7 = vector.shape_cast %6 : vector<8xf32> to vector<8x1xf32>
    %cst_9 = arith.constant 3.200000e+01 : f32
    %8 = vector.broadcast %cst_9 : f32 to vector<8x1xf32>
    %9 = arith.divf %7, %8 : vector<8x1xf32>
    %10 = vector.broadcast %9 : vector<8x1xf32> to vector<8x32xf32>
    %11 = arith.subf %3, %10 : vector<8x32xf32>
    %12 = arith.mulf %11, %11 : vector<8x32xf32>
    %cst_10 = arith.constant dense<0.000000e+00> : vector<8xf32>
    %13 = vector.multi_reduction <add>, %12, %cst_10 [1] : vector<8x32xf32> to vector<8xf32>
    %14 = vector.shape_cast %13 : vector<8xf32> to vector<8x1xf32>
    %cst_11 = arith.constant 3.200000e+01 : f32
    %15 = vector.broadcast %cst_11 : f32 to vector<8x1xf32>
    %16 = arith.divf %14, %15 : vector<8x1xf32>
    %17 = vector.broadcast %9 : vector<8x1xf32> to vector<8x32xf32>
    %18 = arith.subf %3, %17 : vector<8x32xf32>
    %cst_12 = arith.constant 9.99999996E-13 : f32
    %19 = vector.broadcast %cst_12 : f32 to vector<8x1xf32>
    %20 = arith.addf %16, %19 : vector<8x1xf32>
    %21 = math.rsqrt %20 : vector<8x1xf32>
    %22 = vector.broadcast %21 : vector<8x1xf32> to vector<8x32xf32>
    %23 = arith.mulf %18, %22 : vector<8x32xf32>
    %24 = vector.broadcast %4 : vector<1x32xf32> to vector<8x32xf32>
    %25 = arith.mulf %23, %24 : vector<8x32xf32>
    %26 = vector.broadcast %5 : vector<1x32xf32> to vector<8x32xf32>
    %27 = arith.addf %25, %26 : vector<8x32xf32>
    %c0_13 = arith.constant 0 : index
    %c0_14 = arith.constant 0 : index
    %c0_15 = arith.constant 0 : index
    %28 = vector.load %arg5[%c0_13, %c0_14, %c0_15] : memref<2x32x96xbf16, #tpu.memory_space<vmem>>, vector<1x32x96xbf16>
    %29 = vector.shape_cast %28 : vector<1x32x96xbf16> to vector<32x96xbf16>
    %30 = arith.truncf %27 : vector<8x32xf32> to vector<8x32xbf16>
    %cst_16 = arith.constant dense<0.000000e+00> : vector<8x96xf32>
    %31 = tpu.matmul %30, %29, %cst_16 {dimension_numbers = #tpu.dot_dimension_numbers<[1], [0], [0], [1], [0, 0, 1, 1], [], []>} : vector<8x32xbf16>, vector<32x96xbf16>, vector<8x96xf32> -> vector<8x96xf32>
    %c0_17 = arith.constant 0 : index
    %c0_18 = arith.constant 0 : index
    %c0_19 = arith.constant 0 : index
    %32 = vector.load %arg6[%c0_17, %c0_18, %c0_19] : memref<2x1x96xf32, #tpu.memory_space<vmem>>, vector<1x1x96xf32>
    %33 = vector.shape_cast %32 : vector<1x1x96xf32> to vector<1x96xf32>
    %34 = vector.broadcast %33 : vector<1x96xf32> to vector<8x96xf32>
    %35 = arith.addf %31, %34 : vector<8x96xf32>
    %c0_20 = arith.constant 0 : index
    %c0_21 = arith.constant 0 : index
    %36 = vector.load %arg20[%c0_20, %c0_21] : memref<8x96xf32, #tpu.memory_space<vmem>>, vector<8x96xf32>
    tpu.vector_store %arg20[%c0_20, %c0_21], %35 {strides = array<i32>} : memref<8x96xf32, #tpu.memory_space<vmem>>, vector<8x96xf32>,
    %c0_22 = arith.constant 0 : index
    %c0_23 = arith.constant 0 : index
    %37 = vector.load %arg20[%c0_22, %c0_23] : memref<8x96xf32, #tpu.memory_space<vmem>>, vector<8x8xf32>
    %c0_24 = arith.constant 0 : index
    %c32 = arith.constant 32 : index
    %38 = vector.load %arg20[%c0_24, %c32] : memref<8x96xf32, #tpu.memory_space<vmem>>, vector<8x8xf32>
    %c0_25 = arith.constant 0 : index
    %c64 = arith.constant 64 : index
    %39 = vector.load %arg20[%c0_25, %c64] : memref<8x96xf32, #tpu.memory_space<vmem>>, vector<8x8xf32>
    %40 = arith.truncf %37 : vector<8x8xf32> to vector<8x8xbf16>
    %41 = arith.truncf %38 : vector<8x8xf32> to vector<8x8xbf16>
    %cst_26 = arith.constant dense<0.000000e+00> : vector<8x8xf32>
    %42 = tpu.matmul %40, %41, %cst_26 {dimension_numbers = #tpu.dot_dimension_numbers<[1], [1], [0], [0], [0, 0, 1, 0], [], []>} : vector<8x8xbf16>, vector<8x8xbf16>, vector<8x8xf32> -> vector<8x8xf32>
    %cst_27 = arith.constant 0.353553385 : f32
    %43 = vector.broadcast %cst_27 : f32 to vector<8x8xf32>
    %44 = arith.mulf %42, %43 : vector<8x8xf32>
    %45 = vector.broadcast %1 : vector<1x8xf32> to vector<8x8xf32>
    %46 = arith.addf %44, %45 : vector<8x8xf32>
    %cst_28 = arith.constant dense<0xFF800000> : vector<8xf32>
    %47 = vector.multi_reduction <maximumf>, %46, %cst_28 [1] : vector<8x8xf32> to vector<8xf32>
    %48 = vector.shape_cast %47 : vector<8xf32> to vector<8x1xf32>
    %49 = vector.broadcast %48 : vector<8x1xf32> to vector<8x8xf32>
    %50 = arith.subf %46, %49 : vector<8x8xf32>
    %51 = math.exp %50 : vector<8x8xf32>
    %cst_29 = arith.constant dense<0.000000e+00> : vector<8xf32>
    %52 = vector.multi_reduction <add>, %51, %cst_29 [1] : vector<8x8xf32> to vector<8xf32>
    %53 = vector.shape_cast %52 : vector<8xf32> to vector<8x1xf32>
    %54 = tpu.reciprocal %53 {approx = true} : vector<8x1xf32> -> vector<8x1xf32>
    %55 = vector.broadcast %54 : vector<8x1xf32> to vector<8x8xf32>
    %56 = arith.mulf %51, %55 : vector<8x8xf32>
    %57 = arith.truncf %56 : vector<8x8xf32> to vector<8x8xbf16>
    %58 = arith.truncf %39 : vector<8x8xf32> to vector<8x8xbf16>
    %cst_30 = arith.constant dense<0.000000e+00> : vector<8x8xf32>
    %59 = tpu.matmul %57, %58, %cst_30 {dimension_numbers = #tpu.dot_dimension_numbers<[1], [0], [0], [1], [0, 0, 1, 1], [], []>} : vector<8x8xbf16>, vector<8x8xbf16>, vector<8x8xf32> -> vector<8x8xf32>
    %c0_31 = arith.constant 0 : index
    %c0_32 = arith.constant 0 : index
    %60 = vector.load %arg21[%c0_31, %c0_32] : memref<8x32xf32, #tpu.memory_space<vmem>>, vector<8x8xf32>
    tpu.vector_store %arg21[%c0_31, %c0_32], %59 {strides = array<i32>} : memref<8x32xf32, #tpu.memory_space<vmem>>, vector<8x8xf32>,
    %c0_33 = arith.constant 0 : index
    %c8 = arith.constant 8 : index
    %61 = vector.load %arg20[%c0_33, %c8] : memref<8x96xf32, #tpu.memory_space<vmem>>, vector<8x8xf32>
    %c0_34 = arith.constant 0 : index
    %c40 = arith.constant 40 : index
    %62 = vector.load %arg20[%c0_34, %c40] : memref<8x96xf32, #tpu.memory_space<vmem>>, vector<8x8xf32>
    %c0_35 = arith.constant 0 : index
    %c72 = arith.constant 72 : index
    %63 = vector.load %arg20[%c0_35, %c72] : memref<8x96xf32, #tpu.memory_space<vmem>>, vector<8x8xf32>
    %64 = arith.truncf %61 : vector<8x8xf32> to vector<8x8xbf16>
    %65 = arith.truncf %62 : vector<8x8xf32> to vector<8x8xbf16>
    %cst_36 = arith.constant dense<0.000000e+00> : vector<8x8xf32>
    %66 = tpu.matmul %64, %65, %cst_36 {dimension_numbers = #tpu.dot_dimension_numbers<[1], [1], [0], [0], [0, 0, 1, 0], [], []>} : vector<8x8xbf16>, vector<8x8xbf16>, vector<8x8xf32> -> vector<8x8xf32>
    %cst_37 = arith.constant 0.353553385 : f32
    %67 = vector.broadcast %cst_37 : f32 to vector<8x8xf32>
    %68 = arith.mulf %66, %67 : vector<8x8xf32>
    %69 = vector.broadcast %1 : vector<1x8xf32> to vector<8x8xf32>
    %70 = arith.addf %68, %69 : vector<8x8xf32>
    %cst_38 = arith.constant dense<0xFF800000> : vector<8xf32>
    %71 = vector.multi_reduction <maximumf>, %70, %cst_38 [1] : vector<8x8xf32> to vector<8xf32>
    %72 = vector.shape_cast %71 : vector<8xf32> to vector<8x1xf32>
    %73 = vector.broadcast %72 : vector<8x1xf32> to vector<8x8xf32>
    %74 = arith.subf %70, %73 : vector<8x8xf32>
    %75 = math.exp %74 : vector<8x8xf32>
    %cst_39 = arith.constant dense<0.000000e+00> : vector<8xf32>
    %76 = vector.multi_reduction <add>, %75, %cst_39 [1] : vector<8x8xf32> to vector<8xf32>
    %77 = vector.shape_cast %76 : vector<8xf32> to vector<8x1xf32>
    %78 = tpu.reciprocal %77 {approx = true} : vector<8x1xf32> -> vector<8x1xf32>
    %79 = vector.broadcast %78 : vector<8x1xf32> to vector<8x8xf32>
    %80 = arith.mulf %75, %79 : vector<8x8xf32>
    %81 = arith.truncf %80 : vector<8x8xf32> to vector<8x8xbf16>
    %82 = arith.truncf %63 : vector<8x8xf32> to vector<8x8xbf16>
    %cst_40 = arith.constant dense<0.000000e+00> : vector<8x8xf32>
    %83 = tpu.matmul %81, %82, %cst_40 {dimension_numbers = #tpu.dot_dimension_numbers<[1], [0], [0], [1], [0, 0, 1, 1], [], []>} : vector<8x8xbf16>, vector<8x8xbf16>, vector<8x8xf32> -> vector<8x8xf32>
    %c0_41 = arith.constant 0 : index
    %c8_42 = arith.constant 8 : index
    %84 = vector.load %arg21[%c0_41, %c8_42] : memref<8x32xf32, #tpu.memory_space<vmem>>, vector<8x8xf32>
    tpu.vector_store %arg21[%c0_41, %c8_42], %83 {strides = array<i32>} : memref<8x32xf32, #tpu.memory_space<vmem>>, vector<8x8xf32>,
    %c0_43 = arith.constant 0 : index
    %c16 = arith.constant 16 : index
    %85 = vector.load %arg20[%c0_43, %c16] : memref<8x96xf32, #tpu.memory_space<vmem>>, vector<8x8xf32>
    %c0_44 = arith.constant 0 : index
    %c48 = arith.constant 48 : index
    %86 = vector.load %arg20[%c0_44, %c48] : memref<8x96xf32, #tpu.memory_space<vmem>>, vector<8x8xf32>
    %c0_45 = arith.constant 0 : index
    %c80 = arith.constant 80 : index
    %87 = vector.load %arg20[%c0_45, %c80] : memref<8x96xf32, #tpu.memory_space<vmem>>, vector<8x8xf32>
    %88 = arith.truncf %85 : vector<8x8xf32> to vector<8x8xbf16>
    %89 = arith.truncf %86 : vector<8x8xf32> to vector<8x8xbf16>
    %cst_46 = arith.constant dense<0.000000e+00> : vector<8x8xf32>
    %90 = tpu.matmul %88, %89, %cst_46 {dimension_numbers = #tpu.dot_dimension_numbers<[1], [1], [0], [0], [0, 0, 1, 0], [], []>} : vector<8x8xbf16>, vector<8x8xbf16>, vector<8x8xf32> -> vector<8x8xf32>
    %cst_47 = arith.constant 0.353553385 : f32
    %91 = vector.broadcast %cst_47 : f32 to vector<8x8xf32>
    %92 = arith.mulf %90, %91 : vector<8x8xf32>
    %93 = vector.broadcast %1 : vector<1x8xf32> to vector<8x8xf32>
    %94 = arith.addf %92, %93 : vector<8x8xf32>
    %cst_48 = arith.constant dense<0xFF800000> : vector<8xf32>
    %95 = vector.multi_reduction <maximumf>, %94, %cst_48 [1] : vector<8x8xf32> to vector<8xf32>
    %96 = vector.shape_cast %95 : vector<8xf32> to vector<8x1xf32>
    %97 = vector.broadcast %96 : vector<8x1xf32> to vector<8x8xf32>
    %98 = arith.subf %94, %97 : vector<8x8xf32>
    %99 = math.exp %98 : vector<8x8xf32>
    %cst_49 = arith.constant dense<0.000000e+00> : vector<8xf32>
    %100 = vector.multi_reduction <add>, %99, %cst_49 [1] : vector<8x8xf32> to vector<8xf32>
    %101 = vector.shape_cast %100 : vector<8xf32> to vector<8x1xf32>
    %102 = tpu.reciprocal %101 {approx = true} : vector<8x1xf32> -> vector<8x1xf32>
    %103 = vector.broadcast %102 : vector<8x1xf32> to vector<8x8xf32>
    %104 = arith.mulf %99, %103 : vector<8x8xf32>
    %105 = arith.truncf %104 : vector<8x8xf32> to vector<8x8xbf16>
    %106 = arith.truncf %87 : vector<8x8xf32> to vector<8x8xbf16>
    %cst_50 = arith.constant dense<0.000000e+00> : vector<8x8xf32>
    %107 = tpu.matmul %105, %106, %cst_50 {dimension_numbers = #tpu.dot_dimension_numbers<[1], [0], [0], [1], [0, 0, 1, 1], [], []>} : vector<8x8xbf16>, vector<8x8xbf16>, vector<8x8xf32> -> vector<8x8xf32>
    %c0_51 = arith.constant 0 : index
    %c16_52 = arith.constant 16 : index
    %108 = vector.load %arg21[%c0_51, %c16_52] : memref<8x32xf32, #tpu.memory_space<vmem>>, vector<8x8xf32>
    tpu.vector_store %arg21[%c0_51, %c16_52], %107 {strides = array<i32>} : memref<8x32xf32, #tpu.memory_space<vmem>>, vector<8x8xf32>,
    %c0_53 = arith.constant 0 : index
    %c24 = arith.constant 24 : index
    %109 = vector.load %arg20[%c0_53, %c24] : memref<8x96xf32, #tpu.memory_space<vmem>>, vector<8x8xf32>
    %c0_54 = arith.constant 0 : index
    %c56 = arith.constant 56 : index
    %110 = vector.load %arg20[%c0_54, %c56] : memref<8x96xf32, #tpu.memory_space<vmem>>, vector<8x8xf32>
    %c0_55 = arith.constant 0 : index
    %c88 = arith.constant 88 : index
    %111 = vector.load %arg20[%c0_55, %c88] : memref<8x96xf32, #tpu.memory_space<vmem>>, vector<8x8xf32>
    %112 = arith.truncf %109 : vector<8x8xf32> to vector<8x8xbf16>
    %113 = arith.truncf %110 : vector<8x8xf32> to vector<8x8xbf16>
    %cst_56 = arith.constant dense<0.000000e+00> : vector<8x8xf32>
    %114 = tpu.matmul %112, %113, %cst_56 {dimension_numbers = #tpu.dot_dimension_numbers<[1], [1], [0], [0], [0, 0, 1, 0], [], []>} : vector<8x8xbf16>, vector<8x8xbf16>, vector<8x8xf32> -> vector<8x8xf32>
    %cst_57 = arith.constant 0.353553385 : f32
    %115 = vector.broadcast %cst_57 : f32 to vector<8x8xf32>
    %116 = arith.mulf %114, %115 : vector<8x8xf32>
    %117 = vector.broadcast %1 : vector<1x8xf32> to vector<8x8xf32>
    %118 = arith.addf %116, %117 : vector<8x8xf32>
    %cst_58 = arith.constant dense<0xFF800000> : vector<8xf32>
    %119 = vector.multi_reduction <maximumf>, %118, %cst_58 [1] : vector<8x8xf32> to vector<8xf32>
    %120 = vector.shape_cast %119 : vector<8xf32> to vector<8x1xf32>
    %121 = vector.broadcast %120 : vector<8x1xf32> to vector<8x8xf32>
    %122 = arith.subf %118, %121 : vector<8x8xf32>
    %123 = math.exp %122 : vector<8x8xf32>
    %cst_59 = arith.constant dense<0.000000e+00> : vector<8xf32>
    %124 = vector.multi_reduction <add>, %123, %cst_59 [1] : vector<8x8xf32> to vector<8xf32>
    %125 = vector.shape_cast %124 : vector<8xf32> to vector<8x1xf32>
    %126 = tpu.reciprocal %125 {approx = true} : vector<8x1xf32> -> vector<8x1xf32>
    %127 = vector.broadcast %126 : vector<8x1xf32> to vector<8x8xf32>
    %128 = arith.mulf %123, %127 : vector<8x8xf32>
    %129 = arith.truncf %128 : vector<8x8xf32> to vector<8x8xbf16>
    %130 = arith.truncf %111 : vector<8x8xf32> to vector<8x8xbf16>
    %cst_60 = arith.constant dense<0.000000e+00> : vector<8x8xf32>
    %131 = tpu.matmul %129, %130, %cst_60 {dimension_numbers = #tpu.dot_dimension_numbers<[1], [0], [0], [1], [0, 0, 1, 1], [], []>} : vector<8x8xbf16>, vector<8x8xbf16>, vector<8x8xf32> -> vector<8x8xf32>
    %c0_61 = arith.constant 0 : index
    %c24_62 = arith.constant 24 : index
    %132 = vector.load %arg21[%c0_61, %c24_62] : memref<8x32xf32, #tpu.memory_space<vmem>>, vector<8x8xf32>
    tpu.vector_store %arg21[%c0_61, %c24_62], %131 {strides = array<i32>} : memref<8x32xf32, #tpu.memory_space<vmem>>, vector<8x8xf32>,
    %c0_63 = arith.constant 0 : index
    %c0_64 = arith.constant 0 : index
    %133 = vector.load %arg21[%c0_63, %c0_64] : memref<8x32xf32, #tpu.memory_space<vmem>>, vector<8x32xf32>
    %c0_65 = arith.constant 0 : index
    %c0_66 = arith.constant 0 : index
    %c0_67 = arith.constant 0 : index
    %134 = vector.load %arg7[%c0_65, %c0_66, %c0_67] : memref<2x32x32xbf16, #tpu.memory_space<vmem>>, vector<1x32x32xbf16>
    %135 = vector.shape_cast %134 : vector<1x32x32xbf16> to vector<32x32xbf16>
    %136 = arith.truncf %133 : vector<8x32xf32> to vector<8x32xbf16>
    %cst_68 = arith.constant dense<0.000000e+00> : vector<8x32xf32>
    %137 = tpu.matmul %136, %135, %cst_68 {dimension_numbers = #tpu.dot_dimension_numbers<[1], [0], [0], [1], [0, 0, 1, 1], [], []>} : vector<8x32xbf16>, vector<32x32xbf16>, vector<8x32xf32> -> vector<8x32xf32>
    %c0_69 = arith.constant 0 : index
    %c0_70 = arith.constant 0 : index
    %c0_71 = arith.constant 0 : index
    %138 = vector.load %arg8[%c0_69, %c0_70, %c0_71] : memref<2x1x32xf32, #tpu.memory_space<vmem>>, vector<1x1x32xf32>
    %139 = vector.shape_cast %138 : vector<1x1x32xf32> to vector<1x32xf32>
    %140 = vector.broadcast %139 : vector<1x32xf32> to vector<8x32xf32>
    %141 = arith.addf %137, %140 : vector<8x32xf32>
    %142 = arith.addf %141, %27 : vector<8x32xf32>
    %c0_72 = arith.constant 0 : index
    %c0_73 = arith.constant 0 : index
    %c0_74 = arith.constant 0 : index
    %143 = vector.load %arg9[%c0_72, %c0_73, %c0_74] : memref<2x1x32xf32, #tpu.memory_space<vmem>>, vector<1x1x32xf32>
    %144 = vector.shape_cast %143 : vector<1x1x32xf32> to vector<1x32xf32>
    %c0_75 = arith.constant 0 : index
    %c0_76 = arith.constant 0 : index
    %c0_77 = arith.constant 0 : index
    %145 = vector.load %arg10[%c0_75, %c0_76, %c0_77] : memref<2x1x32xf32, #tpu.memory_space<vmem>>, vector<1x1x32xf32>
    %146 = vector.shape_cast %145 : vector<1x1x32xf32> to vector<1x32xf32>
    %cst_78 = arith.constant dense<0.000000e+00> : vector<8xf32>
    %147 = vector.multi_reduction <add>, %142, %cst_78 [1] : vector<8x32xf32> to vector<8xf32>
    %148 = vector.shape_cast %147 : vector<8xf32> to vector<8x1xf32>
    %cst_79 = arith.constant 3.200000e+01 : f32
    %149 = vector.broadcast %cst_79 : f32 to vector<8x1xf32>
    %150 = arith.divf %148, %149 : vector<8x1xf32>
    %151 = vector.broadcast %150 : vector<8x1xf32> to vector<8x32xf32>
    %152 = arith.subf %142, %151 : vector<8x32xf32>
    %153 = arith.mulf %152, %152 : vector<8x32xf32>
    %cst_80 = arith.constant dense<0.000000e+00> : vector<8xf32>
    %154 = vector.multi_reduction <add>, %153, %cst_80 [1] : vector<8x32xf32> to vector<8xf32>
    %155 = vector.shape_cast %154 : vector<8xf32> to vector<8x1xf32>
    %cst_81 = arith.constant 3.200000e+01 : f32
    %156 = vector.broadcast %cst_81 : f32 to vector<8x1xf32>
    %157 = arith.divf %155, %156 : vector<8x1xf32>
    %158 = vector.broadcast %150 : vector<8x1xf32> to vector<8x32xf32>
    %159 = arith.subf %142, %158 : vector<8x32xf32>
    %cst_82 = arith.constant 9.99999996E-13 : f32
    %160 = vector.broadcast %cst_82 : f32 to vector<8x1xf32>
    %161 = arith.addf %157, %160 : vector<8x1xf32>
    %162 = math.rsqrt %161 : vector<8x1xf32>
    %163 = vector.broadcast %162 : vector<8x1xf32> to vector<8x32xf32>
    %164 = arith.mulf %159, %163 : vector<8x32xf32>
    %165 = vector.broadcast %144 : vector<1x32xf32> to vector<8x32xf32>
    %166 = arith.mulf %164, %165 : vector<8x32xf32>
    %167 = vector.broadcast %146 : vector<1x32xf32> to vector<8x32xf32>
    %168 = arith.addf %166, %167 : vector<8x32xf32>
    %c0_83 = arith.constant 0 : index
    %c0_84 = arith.constant 0 : index
    %c0_85 = arith.constant 0 : index
    %169 = vector.load %arg11[%c0_83, %c0_84, %c0_85] : memref<2x32x64xbf16, #tpu.memory_space<vmem>>, vector<1x32x64xbf16>
    %170 = vector.shape_cast %169 : vector<1x32x64xbf16> to vector<32x64xbf16>
    %171 = arith.truncf %168 : vector<8x32xf32> to vector<8x32xbf16>
    %cst_86 = arith.constant dense<0.000000e+00> : vector<8x64xf32>
    %172 = tpu.matmul %171, %170, %cst_86 {dimension_numbers = #tpu.dot_dimension_numbers<[1], [0], [0], [1], [0, 0, 1, 1], [], []>} : vector<8x32xbf16>, vector<32x64xbf16>, vector<8x64xf32> -> vector<8x64xf32>
    %c0_87 = arith.constant 0 : index
    %c0_88 = arith.constant 0 : index
    %c0_89 = arith.constant 0 : index
    %173 = vector.load %arg12[%c0_87, %c0_88, %c0_89] : memref<2x1x64xf32, #tpu.memory_space<vmem>>, vector<1x1x64xf32>
    %174 = vector.shape_cast %173 : vector<1x1x64xf32> to vector<1x64xf32>
    %175 = vector.broadcast %174 : vector<1x64xf32> to vector<8x64xf32>
    %176 = arith.addf %172, %175 : vector<8x64xf32>
    %cst_90 = arith.constant 5.000000e-01 : f32
    %177 = vector.broadcast %cst_90 : f32 to vector<8x64xf32>
    %178 = arith.mulf %177, %176 : vector<8x64xf32>
    %cst_91 = arith.constant 0.707106769 : f32
    %179 = vector.broadcast %cst_91 : f32 to vector<8x64xf32>
    %180 = arith.mulf %176, %179 : vector<8x64xf32>
    %181 = math.erf %180 : vector<8x64xf32>
    %cst_92 = arith.constant 1.000000e+00 : f32
    %182 = vector.broadcast %cst_92 : f32 to vector<8x64xf32>
    %183 = arith.addf %182, %181 : vector<8x64xf32>
    %184 = arith.mulf %178, %183 : vector<8x64xf32>
    %c0_93 = arith.constant 0 : index
    %c0_94 = arith.constant 0 : index
    %c0_95 = arith.constant 0 : index
    %185 = vector.load %arg13[%c0_93, %c0_94, %c0_95] : memref<2x64x32xbf16, #tpu.memory_space<vmem>>, vector<1x64x32xbf16>
    %186 = vector.shape_cast %185 : vector<1x64x32xbf16> to vector<64x32xbf16>
    %187 = arith.truncf %184 : vector<8x64xf32> to vector<8x64xbf16>
    %cst_96 = arith.constant dense<0.000000e+00> : vector<8x32xf32>
    %188 = tpu.matmul %187, %186, %cst_96 {dimension_numbers = #tpu.dot_dimension_numbers<[1], [0], [0], [1], [0, 0, 1, 1], [], []>} : vector<8x64xbf16>, vector<64x32xbf16>, vector<8x32xf32> -> vector<8x32xf32>
    %c0_97 = arith.constant 0 : index
    %c0_98 = arith.constant 0 : index
    %c0_99 = arith.constant 0 : index
    %189 = vector.load %arg14[%c0_97, %c0_98, %c0_99] : memref<2x1x32xf32, #tpu.memory_space<vmem>>, vector<1x1x32xf32>
    %190 = vector.shape_cast %189 : vector<1x1x32xf32> to vector<1x32xf32>
    %191 = vector.broadcast %190 : vector<1x32xf32> to vector<8x32xf32>
    %192 = arith.addf %188, %191 : vector<8x32xf32>
    %193 = arith.addf %192, %168 : vector<8x32xf32>
    %c0_100 = arith.constant 0 : index
    %c0_101 = arith.constant 0 : index
    %c0_102 = arith.constant 0 : index
    %194 = vector.load %arg15[%c0_100, %c0_101, %c0_102] : memref<2x1x32xf32, #tpu.memory_space<vmem>>, vector<1x1x32xf32>
    %195 = vector.shape_cast %194 : vector<1x1x32xf32> to vector<1x32xf32>
    %c0_103 = arith.constant 0 : index
    %c0_104 = arith.constant 0 : index
    %c0_105 = arith.constant 0 : index
    %196 = vector.load %arg16[%c0_103, %c0_104, %c0_105] : memref<2x1x32xf32, #tpu.memory_space<vmem>>, vector<1x1x32xf32>
    %197 = vector.shape_cast %196 : vector<1x1x32xf32> to vector<1x32xf32>
    %cst_106 = arith.constant dense<0.000000e+00> : vector<8xf32>
    %198 = vector.multi_reduction <add>, %193, %cst_106 [1] : vector<8x32xf32> to vector<8xf32>
    %199 = vector.shape_cast %198 : vector<8xf32> to vector<8x1xf32>
    %cst_107 = arith.constant 3.200000e+01 : f32
    %200 = vector.broadcast %cst_107 : f32 to vector<8x1xf32>
    %201 = arith.divf %199, %200 : vector<8x1xf32>
    %202 = vector.broadcast %201 : vector<8x1xf32> to vector<8x32xf32>
    %203 = arith.subf %193, %202 : vector<8x32xf32>
    %204 = arith.mulf %203, %203 : vector<8x32xf32>
    %cst_108 = arith.constant dense<0.000000e+00> : vector<8xf32>
    %205 = vector.multi_reduction <add>, %204, %cst_108 [1] : vector<8x32xf32> to vector<8xf32>
    %206 = vector.shape_cast %205 : vector<8xf32> to vector<8x1xf32>
    %cst_109 = arith.constant 3.200000e+01 : f32
    %207 = vector.broadcast %cst_109 : f32 to vector<8x1xf32>
    %208 = arith.divf %206, %207 : vector<8x1xf32>
    %209 = vector.broadcast %201 : vector<8x1xf32> to vector<8x32xf32>
    %210 = arith.subf %193, %209 : vector<8x32xf32>
    %cst_110 = arith.constant 9.99999996E-13 : f32
    %211 = vector.broadcast %cst_110 : f32 to vector<8x1xf32>
    %212 = arith.addf %208, %211 : vector<8x1xf32>
    %213 = math.rsqrt %212 : vector<8x1xf32>
    %214 = vector.broadcast %213 : vector<8x1xf32> to vector<8x32xf32>
    %215 = arith.mulf %210, %214 : vector<8x32xf32>
    %216 = vector.broadcast %195 : vector<1x32xf32> to vector<8x32xf32>
    %217 = arith.mulf %215, %216 : vector<8x32xf32>
    %218 = vector.broadcast %197 : vector<1x32xf32> to vector<8x32xf32>
    %219 = arith.addf %217, %218 : vector<8x32xf32>
    %c1 = arith.constant 1 : index
    %c0_111 = arith.constant 0 : index
    %c0_112 = arith.constant 0 : index
    %220 = vector.load %arg5[%c1, %c0_111, %c0_112] : memref<2x32x96xbf16, #tpu.memory_space<vmem>>, vector<1x32x96xbf16>
    %221 = vector.shape_cast %220 : vector<1x32x96xbf16> to vector<32x96xbf16>
    %222 = arith.truncf %219 : vector<8x32xf32> to vector<8x32xbf16>
    %cst_113 = arith.constant dense<0.000000e+00> : vector<8x96xf32>
    %223 = tpu.matmul %222, %221, %cst_113 {dimension_numbers = #tpu.dot_dimension_numbers<[1], [0], [0], [1], [0, 0, 1, 1], [], []>} : vector<8x32xbf16>, vector<32x96xbf16>, vector<8x96xf32> -> vector<8x96xf32>
    %c1_114 = arith.constant 1 : index
    %c0_115 = arith.constant 0 : index
    %c0_116 = arith.constant 0 : index
    %224 = vector.load %arg6[%c1_114, %c0_115, %c0_116] : memref<2x1x96xf32, #tpu.memory_space<vmem>>, vector<1x1x96xf32>
    %225 = vector.shape_cast %224 : vector<1x1x96xf32> to vector<1x96xf32>
    %226 = vector.broadcast %225 : vector<1x96xf32> to vector<8x96xf32>
    %227 = arith.addf %223, %226 : vector<8x96xf32>
    %c0_117 = arith.constant 0 : index
    %c0_118 = arith.constant 0 : index
    %228 = vector.load %arg20[%c0_117, %c0_118] : memref<8x96xf32, #tpu.memory_space<vmem>>, vector<8x96xf32>
    tpu.vector_store %arg20[%c0_117, %c0_118], %227 {strides = array<i32>} : memref<8x96xf32, #tpu.memory_space<vmem>>, vector<8x96xf32>,
    %c0_119 = arith.constant 0 : index
    %c0_120 = arith.constant 0 : index
    %229 = vector.load %arg20[%c0_119, %c0_120] : memref<8x96xf32, #tpu.memory_space<vmem>>, vector<8x8xf32>
    %c0_121 = arith.constant 0 : index
    %c32_122 = arith.constant 32 : index
    %230 = vector.load %arg20[%c0_121, %c32_122] : memref<8x96xf32, #tpu.memory_space<vmem>>, vector<8x8xf32>
    %c0_123 = arith.constant 0 : index
    %c64_124 = arith.constant 64 : index
    %231 = vector.load %arg20[%c0_123, %c64_124] : memref<8x96xf32, #tpu.memory_space<vmem>>, vector<8x8xf32>
    %232 = arith.truncf %229 : vector<8x8xf32> to vector<8x8xbf16>
    %233 = arith.truncf %230 : vector<8x8xf32> to vector<8x8xbf16>
    %cst_125 = arith.constant dense<0.000000e+00> : vector<8x8xf32>
    %234 = tpu.matmul %232, %233, %cst_125 {dimension_numbers = #tpu.dot_dimension_numbers<[1], [1], [0], [0], [0, 0, 1, 0], [], []>} : vector<8x8xbf16>, vector<8x8xbf16>, vector<8x8xf32> -> vector<8x8xf32>
    %cst_126 = arith.constant 0.353553385 : f32
    %235 = vector.broadcast %cst_126 : f32 to vector<8x8xf32>
    %236 = arith.mulf %234, %235 : vector<8x8xf32>
    %237 = vector.broadcast %1 : vector<1x8xf32> to vector<8x8xf32>
    %238 = arith.addf %236, %237 : vector<8x8xf32>
    %cst_127 = arith.constant dense<0xFF800000> : vector<8xf32>
    %239 = vector.multi_reduction <maximumf>, %238, %cst_127 [1] : vector<8x8xf32> to vector<8xf32>
    %240 = vector.shape_cast %239 : vector<8xf32> to vector<8x1xf32>
    %241 = vector.broadcast %240 : vector<8x1xf32> to vector<8x8xf32>
    %242 = arith.subf %238, %241 : vector<8x8xf32>
    %243 = math.exp %242 : vector<8x8xf32>
    %cst_128 = arith.constant dense<0.000000e+00> : vector<8xf32>
    %244 = vector.multi_reduction <add>, %243, %cst_128 [1] : vector<8x8xf32> to vector<8xf32>
    %245 = vector.shape_cast %244 : vector<8xf32> to vector<8x1xf32>
    %246 = tpu.reciprocal %245 {approx = true} : vector<8x1xf32> -> vector<8x1xf32>
    %247 = vector.broadcast %246 : vector<8x1xf32> to vector<8x8xf32>
    %248 = arith.mulf %243, %247 : vector<8x8xf32>
    %249 = arith.truncf %248 : vector<8x8xf32> to vector<8x8xbf16>
    %250 = arith.truncf %231 : vector<8x8xf32> to vector<8x8xbf16>
    %cst_129 = arith.constant dense<0.000000e+00> : vector<8x8xf32>
    %251 = tpu.matmul %249, %250, %cst_129 {dimension_numbers = #tpu.dot_dimension_numbers<[1], [0], [0], [1], [0, 0, 1, 1], [], []>} : vector<8x8xbf16>, vector<8x8xbf16>, vector<8x8xf32> -> vector<8x8xf32>
    %c0_130 = arith.constant 0 : index
    %c0_131 = arith.constant 0 : index
    %252 = vector.load %arg21[%c0_130, %c0_131] : memref<8x32xf32, #tpu.memory_space<vmem>>, vector<8x8xf32>
    tpu.vector_store %arg21[%c0_130, %c0_131], %251 {strides = array<i32>} : memref<8x32xf32, #tpu.memory_space<vmem>>, vector<8x8xf32>,
    %c0_132 = arith.constant 0 : index
    %c8_133 = arith.constant 8 : index
    %253 = vector.load %arg20[%c0_132, %c8_133] : memref<8x96xf32, #tpu.memory_space<vmem>>, vector<8x8xf32>
    %c0_134 = arith.constant 0 : index
    %c40_135 = arith.constant 40 : index
    %254 = vector.load %arg20[%c0_134, %c40_135] : memref<8x96xf32, #tpu.memory_space<vmem>>, vector<8x8xf32>
    %c0_136 = arith.constant 0 : index
    %c72_137 = arith.constant 72 : index
    %255 = vector.load %arg20[%c0_136, %c72_137] : memref<8x96xf32, #tpu.memory_space<vmem>>, vector<8x8xf32>
    %256 = arith.truncf %253 : vector<8x8xf32> to vector<8x8xbf16>
    %257 = arith.truncf %254 : vector<8x8xf32> to vector<8x8xbf16>
    %cst_138 = arith.constant dense<0.000000e+00> : vector<8x8xf32>
    %258 = tpu.matmul %256, %257, %cst_138 {dimension_numbers = #tpu.dot_dimension_numbers<[1], [1], [0], [0], [0, 0, 1, 0], [], []>} : vector<8x8xbf16>, vector<8x8xbf16>, vector<8x8xf32> -> vector<8x8xf32>
    %cst_139 = arith.constant 0.353553385 : f32
    %259 = vector.broadcast %cst_139 : f32 to vector<8x8xf32>
    %260 = arith.mulf %258, %259 : vector<8x8xf32>
    %261 = vector.broadcast %1 : vector<1x8xf32> to vector<8x8xf32>
    %262 = arith.addf %260, %261 : vector<8x8xf32>
    %cst_140 = arith.constant dense<0xFF800000> : vector<8xf32>
    %263 = vector.multi_reduction <maximumf>, %262, %cst_140 [1] : vector<8x8xf32> to vector<8xf32>
    %264 = vector.shape_cast %263 : vector<8xf32> to vector<8x1xf32>
    %265 = vector.broadcast %264 : vector<8x1xf32> to vector<8x8xf32>
    %266 = arith.subf %262, %265 : vector<8x8xf32>
    %267 = math.exp %266 : vector<8x8xf32>
    %cst_141 = arith.constant dense<0.000000e+00> : vector<8xf32>
    %268 = vector.multi_reduction <add>, %267, %cst_141 [1] : vector<8x8xf32> to vector<8xf32>
    %269 = vector.shape_cast %268 : vector<8xf32> to vector<8x1xf32>
    %270 = tpu.reciprocal %269 {approx = true} : vector<8x1xf32> -> vector<8x1xf32>
    %271 = vector.broadcast %270 : vector<8x1xf32> to vector<8x8xf32>
    %272 = arith.mulf %267, %271 : vector<8x8xf32>
    %273 = arith.truncf %272 : vector<8x8xf32> to vector<8x8xbf16>
    %274 = arith.truncf %255 : vector<8x8xf32> to vector<8x8xbf16>
    %cst_142 = arith.constant dense<0.000000e+00> : vector<8x8xf32>
    %275 = tpu.matmul %273, %274, %cst_142 {dimension_numbers = #tpu.dot_dimension_numbers<[1], [0], [0], [1], [0, 0, 1, 1], [], []>} : vector<8x8xbf16>, vector<8x8xbf16>, vector<8x8xf32> -> vector<8x8xf32>
    %c0_143 = arith.constant 0 : index
    %c8_144 = arith.constant 8 : index
    %276 = vector.load %arg21[%c0_143, %c8_144] : memref<8x32xf32, #tpu.memory_space<vmem>>, vector<8x8xf32>
    tpu.vector_store %arg21[%c0_143, %c8_144], %275 {strides = array<i32>} : memref<8x32xf32, #tpu.memory_space<vmem>>, vector<8x8xf32>,
    %c0_145 = arith.constant 0 : index
    %c16_146 = arith.constant 16 : index
    %277 = vector.load %arg20[%c0_145, %c16_146] : memref<8x96xf32, #tpu.memory_space<vmem>>, vector<8x8xf32>
    %c0_147 = arith.constant 0 : index
    %c48_148 = arith.constant 48 : index
    %278 = vector.load %arg20[%c0_147, %c48_148] : memref<8x96xf32, #tpu.memory_space<vmem>>, vector<8x8xf32>
    %c0_149 = arith.constant 0 : index
    %c80_150 = arith.constant 80 : index
    %279 = vector.load %arg20[%c0_149, %c80_150] : memref<8x96xf32, #tpu.memory_space<vmem>>, vector<8x8xf32>
    %280 = arith.truncf %277 : vector<8x8xf32> to vector<8x8xbf16>
    %281 = arith.truncf %278 : vector<8x8xf32> to vector<8x8xbf16>
    %cst_151 = arith.constant dense<0.000000e+00> : vector<8x8xf32>
    %282 = tpu.matmul %280, %281, %cst_151 {dimension_numbers = #tpu.dot_dimension_numbers<[1], [1], [0], [0], [0, 0, 1, 0], [], []>} : vector<8x8xbf16>, vector<8x8xbf16>, vector<8x8xf32> -> vector<8x8xf32>
    %cst_152 = arith.constant 0.353553385 : f32
    %283 = vector.broadcast %cst_152 : f32 to vector<8x8xf32>
    %284 = arith.mulf %282, %283 : vector<8x8xf32>
    %285 = vector.broadcast %1 : vector<1x8xf32> to vector<8x8xf32>
    %286 = arith.addf %284, %285 : vector<8x8xf32>
    %cst_153 = arith.constant dense<0xFF800000> : vector<8xf32>
    %287 = vector.multi_reduction <maximumf>, %286, %cst_153 [1] : vector<8x8xf32> to vector<8xf32>
    %288 = vector.shape_cast %287 : vector<8xf32> to vector<8x1xf32>
    %289 = vector.broadcast %288 : vector<8x1xf32> to vector<8x8xf32>
    %290 = arith.subf %286, %289 : vector<8x8xf32>
    %291 = math.exp %290 : vector<8x8xf32>
    %cst_154 = arith.constant dense<0.000000e+00> : vector<8xf32>
    %292 = vector.multi_reduction <add>, %291, %cst_154 [1] : vector<8x8xf32> to vector<8xf32>
    %293 = vector.shape_cast %292 : vector<8xf32> to vector<8x1xf32>
    %294 = tpu.reciprocal %293 {approx = true} : vector<8x1xf32> -> vector<8x1xf32>
    %295 = vector.broadcast %294 : vector<8x1xf32> to vector<8x8xf32>
    %296 = arith.mulf %291, %295 : vector<8x8xf32>
    %297 = arith.truncf %296 : vector<8x8xf32> to vector<8x8xbf16>
    %298 = arith.truncf %279 : vector<8x8xf32> to vector<8x8xbf16>
    %cst_155 = arith.constant dense<0.000000e+00> : vector<8x8xf32>
    %299 = tpu.matmul %297, %298, %cst_155 {dimension_numbers = #tpu.dot_dimension_numbers<[1], [0], [0], [1], [0, 0, 1, 1], [], []>} : vector<8x8xbf16>, vector<8x8xbf16>, vector<8x8xf32> -> vector<8x8xf32>
    %c0_156 = arith.constant 0 : index
    %c16_157 = arith.constant 16 : index
    %300 = vector.load %arg21[%c0_156, %c16_157] : memref<8x32xf32, #tpu.memory_space<vmem>>, vector<8x8xf32>
    tpu.vector_store %arg21[%c0_156, %c16_157], %299 {strides = array<i32>} : memref<8x32xf32, #tpu.memory_space<vmem>>, vector<8x8xf32>,
    %c0_158 = arith.constant 0 : index
    %c24_159 = arith.constant 24 : index
    %301 = vector.load %arg20[%c0_158, %c24_159] : memref<8x96xf32, #tpu.memory_space<vmem>>, vector<8x8xf32>
    %c0_160 = arith.constant 0 : index
    %c56_161 = arith.constant 56 : index
    %302 = vector.load %arg20[%c0_160, %c56_161] : memref<8x96xf32, #tpu.memory_space<vmem>>, vector<8x8xf32>
    %c0_162 = arith.constant 0 : index
    %c88_163 = arith.constant 88 : index
    %303 = vector.load %arg20[%c0_162, %c88_163] : memref<8x96xf32, #tpu.memory_space<vmem>>, vector<8x8xf32>
    %304 = arith.truncf %301 : vector<8x8xf32> to vector<8x8xbf16>
    %305 = arith.truncf %302 : vector<8x8xf32> to vector<8x8xbf16>
    %cst_164 = arith.constant dense<0.000000e+00> : vector<8x8xf32>
    %306 = tpu.matmul %304, %305, %cst_164 {dimension_numbers = #tpu.dot_dimension_numbers<[1], [1], [0], [0], [0, 0, 1, 0], [], []>} : vector<8x8xbf16>, vector<8x8xbf16>, vector<8x8xf32> -> vector<8x8xf32>
    %cst_165 = arith.constant 0.353553385 : f32
    %307 = vector.broadcast %cst_165 : f32 to vector<8x8xf32>
    %308 = arith.mulf %306, %307 : vector<8x8xf32>
    %309 = vector.broadcast %1 : vector<1x8xf32> to vector<8x8xf32>
    %310 = arith.addf %308, %309 : vector<8x8xf32>
    %cst_166 = arith.constant dense<0xFF800000> : vector<8xf32>
    %311 = vector.multi_reduction <maximumf>, %310, %cst_166 [1] : vector<8x8xf32> to vector<8xf32>
    %312 = vector.shape_cast %311 : vector<8xf32> to vector<8x1xf32>
    %313 = vector.broadcast %312 : vector<8x1xf32> to vector<8x8xf32>
    %314 = arith.subf %310, %313 : vector<8x8xf32>
    %315 = math.exp %314 : vector<8x8xf32>
    %cst_167 = arith.constant dense<0.000000e+00> : vector<8xf32>
    %316 = vector.multi_reduction <add>, %315, %cst_167 [1] : vector<8x8xf32> to vector<8xf32>
    %317 = vector.shape_cast %316 : vector<8xf32> to vector<8x1xf32>
    %318 = tpu.reciprocal %317 {approx = true} : vector<8x1xf32> -> vector<8x1xf32>
    %319 = vector.broadcast %318 : vector<8x1xf32> to vector<8x8xf32>
    %320 = arith.mulf %315, %319 : vector<8x8xf32>
    %321 = arith.truncf %320 : vector<8x8xf32> to vector<8x8xbf16>
    %322 = arith.truncf %303 : vector<8x8xf32> to vector<8x8xbf16>
    %cst_168 = arith.constant dense<0.000000e+00> : vector<8x8xf32>
    %323 = tpu.matmul %321, %322, %cst_168 {dimension_numbers = #tpu.dot_dimension_numbers<[1], [0], [0], [1], [0, 0, 1, 1], [], []>} : vector<8x8xbf16>, vector<8x8xbf16>, vector<8x8xf32> -> vector<8x8xf32>
    %c0_169 = arith.constant 0 : index
    %c24_170 = arith.constant 24 : index
    %324 = vector.load %arg21[%c0_169, %c24_170] : memref<8x32xf32, #tpu.memory_space<vmem>>, vector<8x8xf32>
    tpu.vector_store %arg21[%c0_169, %c24_170], %323 {strides = array<i32>} : memref<8x32xf32, #tpu.memory_space<vmem>>, vector<8x8xf32>,
    %c0_171 = arith.constant 0 : index
    %c0_172 = arith.constant 0 : index
    %325 = vector.load %arg21[%c0_171, %c0_172] : memref<8x32xf32, #tpu.memory_space<vmem>>, vector<8x32xf32>
    %c1_173 = arith.constant 1 : index
    %c0_174 = arith.constant 0 : index
    %c0_175 = arith.constant 0 : index
    %326 = vector.load %arg7[%c1_173, %c0_174, %c0_175] : memref<2x32x32xbf16, #tpu.memory_space<vmem>>, vector<1x32x32xbf16>
    %327 = vector.shape_cast %326 : vector<1x32x32xbf16> to vector<32x32xbf16>
    %328 = arith.truncf %325 : vector<8x32xf32> to vector<8x32xbf16>
    %cst_176 = arith.constant dense<0.000000e+00> : vector<8x32xf32>
    %329 = tpu.matmul %328, %327, %cst_176 {dimension_numbers = #tpu.dot_dimension_numbers<[1], [0], [0], [1], [0, 0, 1, 1], [], []>} : vector<8x32xbf16>, vector<32x32xbf16>, vector<8x32xf32> -> vector<8x32xf32>
    %c1_177 = arith.constant 1 : index
    %c0_178 = arith.constant 0 : index
    %c0_179 = arith.constant 0 : index
    %330 = vector.load %arg8[%c1_177, %c0_178, %c0_179] : memref<2x1x32xf32, #tpu.memory_space<vmem>>, vector<1x1x32xf32>
    %331 = vector.shape_cast %330 : vector<1x1x32xf32> to vector<1x32xf32>
    %332 = vector.broadcast %331 : vector<1x32xf32> to vector<8x32xf32>
    %333 = arith.addf %329, %332 : vector<8x32xf32>
    %334 = arith.addf %333, %219 : vector<8x32xf32>
    %c1_180 = arith.constant 1 : index
    %c0_181 = arith.constant 0 : index
    %c0_182 = arith.constant 0 : index
    %335 = vector.load %arg9[%c1_180, %c0_181, %c0_182] : memref<2x1x32xf32, #tpu.memory_space<vmem>>, vector<1x1x32xf32>
    %336 = vector.shape_cast %335 : vector<1x1x32xf32> to vector<1x32xf32>
    %c1_183 = arith.constant 1 : index
    %c0_184 = arith.constant 0 : index
    %c0_185 = arith.constant 0 : index
    %337 = vector.load %arg10[%c1_183, %c0_184, %c0_185] : memref<2x1x32xf32, #tpu.memory_space<vmem>>, vector<1x1x32xf32>
    %338 = vector.shape_cast %337 : vector<1x1x32xf32> to vector<1x32xf32>
    %cst_186 = arith.constant dense<0.000000e+00> : vector<8xf32>
    %339 = vector.multi_reduction <add>, %334, %cst_186 [1] : vector<8x32xf32> to vector<8xf32>
    %340 = vector.shape_cast %339 : vector<8xf32> to vector<8x1xf32>
    %cst_187 = arith.constant 3.200000e+01 : f32
    %341 = vector.broadcast %cst_187 : f32 to vector<8x1xf32>
    %342 = arith.divf %340, %341 : vector<8x1xf32>
    %343 = vector.broadcast %342 : vector<8x1xf32> to vector<8x32xf32>
    %344 = arith.subf %334, %343 : vector<8x32xf32>
    %345 = arith.mulf %344, %344 : vector<8x32xf32>
    %cst_188 = arith.constant dense<0.000000e+00> : vector<8xf32>
    %346 = vector.multi_reduction <add>, %345, %cst_188 [1] : vector<8x32xf32> to vector<8xf32>
    %347 = vector.shape_cast %346 : vector<8xf32> to vector<8x1xf32>
    %cst_189 = arith.constant 3.200000e+01 : f32
    %348 = vector.broadcast %cst_189 : f32 to vector<8x1xf32>
    %349 = arith.divf %347, %348 : vector<8x1xf32>
    %350 = vector.broadcast %342 : vector<8x1xf32> to vector<8x32xf32>
    %351 = arith.subf %334, %350 : vector<8x32xf32>
    %cst_190 = arith.constant 9.99999996E-13 : f32
    %352 = vector.broadcast %cst_190 : f32 to vector<8x1xf32>
    %353 = arith.addf %349, %352 : vector<8x1xf32>
    %354 = math.rsqrt %353 : vector<8x1xf32>
    %355 = vector.broadcast %354 : vector<8x1xf32> to vector<8x32xf32>
    %356 = arith.mulf %351, %355 : vector<8x32xf32>
    %357 = vector.broadcast %336 : vector<1x32xf32> to vector<8x32xf32>
    %358 = arith.mulf %356, %357 : vector<8x32xf32>
    %359 = vector.broadcast %338 : vector<1x32xf32> to vector<8x32xf32>
    %360 = arith.addf %358, %359 : vector<8x32xf32>
    %c1_191 = arith.constant 1 : index
    %c0_192 = arith.constant 0 : index
    %c0_193 = arith.constant 0 : index
    %361 = vector.load %arg11[%c1_191, %c0_192, %c0_193] : memref<2x32x64xbf16, #tpu.memory_space<vmem>>, vector<1x32x64xbf16>
    %362 = vector.shape_cast %361 : vector<1x32x64xbf16> to vector<32x64xbf16>
    %363 = arith.truncf %360 : vector<8x32xf32> to vector<8x32xbf16>
    %cst_194 = arith.constant dense<0.000000e+00> : vector<8x64xf32>
    %364 = tpu.matmul %363, %362, %cst_194 {dimension_numbers = #tpu.dot_dimension_numbers<[1], [0], [0], [1], [0, 0, 1, 1], [], []>} : vector<8x32xbf16>, vector<32x64xbf16>, vector<8x64xf32> -> vector<8x64xf32>
    %c1_195 = arith.constant 1 : index
    %c0_196 = arith.constant 0 : index
    %c0_197 = arith.constant 0 : index
    %365 = vector.load %arg12[%c1_195, %c0_196, %c0_197] : memref<2x1x64xf32, #tpu.memory_space<vmem>>, vector<1x1x64xf32>
    %366 = vector.shape_cast %365 : vector<1x1x64xf32> to vector<1x64xf32>
    %367 = vector.broadcast %366 : vector<1x64xf32> to vector<8x64xf32>
    %368 = arith.addf %364, %367 : vector<8x64xf32>
    %cst_198 = arith.constant 5.000000e-01 : f32
    %369 = vector.broadcast %cst_198 : f32 to vector<8x64xf32>
    %370 = arith.mulf %369, %368 : vector<8x64xf32>
    %cst_199 = arith.constant 0.707106769 : f32
    %371 = vector.broadcast %cst_199 : f32 to vector<8x64xf32>
    %372 = arith.mulf %368, %371 : vector<8x64xf32>
    %373 = math.erf %372 : vector<8x64xf32>
    %cst_200 = arith.constant 1.000000e+00 : f32
    %374 = vector.broadcast %cst_200 : f32 to vector<8x64xf32>
    %375 = arith.addf %374, %373 : vector<8x64xf32>
    %376 = arith.mulf %370, %375 : vector<8x64xf32>
    %c1_201 = arith.constant 1 : index
    %c0_202 = arith.constant 0 : index
    %c0_203 = arith.constant 0 : index
    %377 = vector.load %arg13[%c1_201, %c0_202, %c0_203] : memref<2x64x32xbf16, #tpu.memory_space<vmem>>, vector<1x64x32xbf16>
    %378 = vector.shape_cast %377 : vector<1x64x32xbf16> to vector<64x32xbf16>
    %379 = arith.truncf %376 : vector<8x64xf32> to vector<8x64xbf16>
    %cst_204 = arith.constant dense<0.000000e+00> : vector<8x32xf32>
    %380 = tpu.matmul %379, %378, %cst_204 {dimension_numbers = #tpu.dot_dimension_numbers<[1], [0], [0], [1], [0, 0, 1, 1], [], []>} : vector<8x64xbf16>, vector<64x32xbf16>, vector<8x32xf32> -> vector<8x32xf32>
    %c1_205 = arith.constant 1 : index
    %c0_206 = arith.constant 0 : index
    %c0_207 = arith.constant 0 : index
    %381 = vector.load %arg14[%c1_205, %c0_206, %c0_207] : memref<2x1x32xf32, #tpu.memory_space<vmem>>, vector<1x1x32xf32>
    %382 = vector.shape_cast %381 : vector<1x1x32xf32> to vector<1x32xf32>
    %383 = vector.broadcast %382 : vector<1x32xf32> to vector<8x32xf32>
    %384 = arith.addf %380, %383 : vector<8x32xf32>
    %385 = arith.addf %384, %360 : vector<8x32xf32>
    %c1_208 = arith.constant 1 : index
    %c0_209 = arith.constant 0 : index
    %c0_210 = arith.constant 0 : index
    %386 = vector.load %arg15[%c1_208, %c0_209, %c0_210] : memref<2x1x32xf32, #tpu.memory_space<vmem>>, vector<1x1x32xf32>
    %387 = vector.shape_cast %386 : vector<1x1x32xf32> to vector<1x32xf32>
    %c1_211 = arith.constant 1 : index
    %c0_212 = arith.constant 0 : index
    %c0_213 = arith.constant 0 : index
    %388 = vector.load %arg16[%c1_211, %c0_212, %c0_213] : memref<2x1x32xf32, #tpu.memory_space<vmem>>, vector<1x1x32xf32>
    %389 = vector.shape_cast %388 : vector<1x1x32xf32> to vector<1x32xf32>
    %cst_214 = arith.constant dense<0.000000e+00> : vector<8xf32>
    %390 = vector.multi_reduction <add>, %385, %cst_214 [1] : vector<8x32xf32> to vector<8xf32>
    %391 = vector.shape_cast %390 : vector<8xf32> to vector<8x1xf32>
    %cst_215 = arith.constant 3.200000e+01 : f32
    %392 = vector.broadcast %cst_215 : f32 to vector<8x1xf32>
    %393 = arith.divf %391, %392 : vector<8x1xf32>
    %394 = vector.broadcast %393 : vector<8x1xf32> to vector<8x32xf32>
    %395 = arith.subf %385, %394 : vector<8x32xf32>
    %396 = arith.mulf %395, %395 : vector<8x32xf32>
    %cst_216 = arith.constant dense<0.000000e+00> : vector<8xf32>
    %397 = vector.multi_reduction <add>, %396, %cst_216 [1] : vector<8x32xf32> to vector<8xf32>
    %398 = vector.shape_cast %397 : vector<8xf32> to vector<8x1xf32>
    %cst_217 = arith.constant 3.200000e+01 : f32
    %399 = vector.broadcast %cst_217 : f32 to vector<8x1xf32>
    %400 = arith.divf %398, %399 : vector<8x1xf32>
    %401 = vector.broadcast %393 : vector<8x1xf32> to vector<8x32xf32>
    %402 = arith.subf %385, %401 : vector<8x32xf32>
    %cst_218 = arith.constant 9.99999996E-13 : f32
    %403 = vector.broadcast %cst_218 : f32 to vector<8x1xf32>
    %404 = arith.addf %400, %403 : vector<8x1xf32>
    %405 = math.rsqrt %404 : vector<8x1xf32>
    %406 = vector.broadcast %405 : vector<8x1xf32> to vector<8x32xf32>
    %407 = arith.mulf %402, %406 : vector<8x32xf32>
    %408 = vector.broadcast %387 : vector<1x32xf32> to vector<8x32xf32>
    %409 = arith.mulf %407, %408 : vector<8x32xf32>
    %410 = vector.broadcast %389 : vector<1x32xf32> to vector<8x32xf32>
    %411 = arith.addf %409, %410 : vector<8x32xf32>
    %cst_219 = arith.constant dense<0.000000e+00> : vector<32xf32>
    %412 = vector.multi_reduction <add>, %411, %cst_219 [0] : vector<8x32xf32> to vector<32xf32>
    %413 = vector.shape_cast %412 : vector<32xf32> to vector<1x32xf32>
    %cst_220 = arith.constant 8.000000e+00 : f32
    %414 = vector.broadcast %cst_220 : f32 to vector<1x32xf32>
    %415 = arith.divf %413, %414 : vector<1x32xf32>
    %cst_221 = arith.constant dense<0xFF800000> : vector<32xf32>
    %416 = vector.multi_reduction <maximumf>, %411, %cst_221 [0] : vector<8x32xf32> to vector<32xf32>
    %417 = vector.shape_cast %416 : vector<32xf32> to vector<1x32xf32>
    %c0_222 = arith.constant 0 : index
    %c0_223 = arith.constant 0 : index
    %418 = vector.load %arg17[%c0_222, %c0_223] : memref<64x128xbf16, #tpu.memory_space<vmem>>, vector<32x128xbf16>
    %419 = arith.truncf %415 : vector<1x32xf32> to vector<1x32xbf16>
    %cst_224 = arith.constant dense<0.000000e+00> : vector<1x128xf32>
    %420 = tpu.matmul %419, %418, %cst_224 {dimension_numbers = #tpu.dot_dimension_numbers<[1], [0], [0], [1], [0, 0, 1, 1], [], []>} : vector<1x32xbf16>, vector<32x128xbf16>, vector<1x128xf32> -> vector<1x128xf32>
    %c32_225 = arith.constant 32 : index
    %c0_226 = arith.constant 0 : index
    %421 = vector.load %arg17[%c32_225, %c0_226] : memref<64x128xbf16, #tpu.memory_space<vmem>>, vector<32x128xbf16>
    %422 = arith.truncf %417 : vector<1x32xf32> to vector<1x32xbf16>
    %cst_227 = arith.constant dense<0.000000e+00> : vector<1x128xf32>
    %423 = tpu.matmul %422, %421, %cst_227 {dimension_numbers = #tpu.dot_dimension_numbers<[1], [0], [0], [1], [0, 0, 1, 1], [], []>} : vector<1x32xbf16>, vector<32x128xbf16>, vector<1x128xf32> -> vector<1x128xf32>
    %424 = arith.addf %420, %423 : vector<1x128xf32>
    %c0_228 = arith.constant 0 : index
    %c0_229 = arith.constant 0 : index
    %425 = vector.load %arg18[%c0_228, %c0_229] : memref<1x128xf32, #tpu.memory_space<vmem>>, vector<1x128xf32>
    %426 = arith.addf %424, %425 : vector<1x128xf32>
    %427 = arith.negf %426 : vector<1x128xf32>
    %428 = math.exp %427 : vector<1x128xf32>
    %cst_230 = arith.constant 1.000000e+00 : f32
    %429 = vector.broadcast %cst_230 : f32 to vector<1x128xf32>
    %430 = arith.addf %429, %428 : vector<1x128xf32>
    %431 = arith.divf %429, %430 : vector<1x128xf32>
    %c0_231 = arith.constant 0 : index
    %c0_232 = arith.constant 0 : index
    %c0_233 = arith.constant 0 : index
    %432 = vector.load %arg19[%c0_231, %c0_232, %c0_233] : memref<1x1x128xf32, #tpu.memory_space<vmem>>, vector<1x1x128xf32>
    %433 = vector.shape_cast %432 : vector<1x1x128xf32> to vector<1x128xf32>
    %434 = vector.shape_cast %431 : vector<1x128xf32> to vector<1x1x128xf32>
    tpu.vector_store %arg19[%c0_231, %c0_232, %c0_233], %434 {strides = array<i32>} : memref<1x1x128xf32, #tpu.memory_space<vmem>>, vector<1x1x128xf32>,
    return
  }
  func.func @transform_0(%arg0: i32) -> (i32, i32, i32) {
    %c0_i32 = arith.constant 0 : i32
    %c0_i32_0 = arith.constant 0 : i32
    %c0_i32_1 = arith.constant 0 : i32
    return %arg0, %c0_i32, %c0_i32_0 : i32, i32, i32
  }
  func.func @transform_1(%arg0: i32) -> (i32, i32, i32) {
    %c0_i32 = arith.constant 0 : i32
    %c0_i32_0 = arith.constant 0 : i32
    %c0_i32_1 = arith.constant 0 : i32
    return %arg0, %c0_i32, %c0_i32_0 : i32, i32, i32
  }
  func.func @transform_2(%arg0: i32) -> (i32, i32) {
    %c0_i32 = arith.constant 0 : i32
    %c0_i32_0 = arith.constant 0 : i32
    %c0_i32_1 = arith.constant 0 : i32
    return %c0_i32, %c0_i32_0 : i32, i32
  }
  func.func @transform_3(%arg0: i32) -> (i32, i32) {
    %c0_i32 = arith.constant 0 : i32
    %c0_i32_0 = arith.constant 0 : i32
    %c0_i32_1 = arith.constant 0 : i32
    return %c0_i32, %c0_i32_0 : i32, i32
  }
  func.func @transform_4(%arg0: i32) -> (i32, i32, i32) {
    %c0_i32 = arith.constant 0 : i32
    %c0_i32_0 = arith.constant 0 : i32
    %c0_i32_1 = arith.constant 0 : i32
    %c0_i32_2 = arith.constant 0 : i32
    return %c0_i32, %c0_i32_0, %c0_i32_1 : i32, i32, i32
  }
  func.func @transform_5(%arg0: i32) -> (i32, i32, i32) {
    %c0_i32 = arith.constant 0 : i32
    %c0_i32_0 = arith.constant 0 : i32
    %c0_i32_1 = arith.constant 0 : i32
    %c0_i32_2 = arith.constant 0 : i32
    return %c0_i32, %c0_i32_0, %c0_i32_1 : i32, i32, i32
  }
  func.func @transform_6(%arg0: i32) -> (i32, i32, i32) {
    %c0_i32 = arith.constant 0 : i32
    %c0_i32_0 = arith.constant 0 : i32
    %c0_i32_1 = arith.constant 0 : i32
    %c0_i32_2 = arith.constant 0 : i32
    return %c0_i32, %c0_i32_0, %c0_i32_1 : i32, i32, i32
  }
  func.func @transform_7(%arg0: i32) -> (i32, i32, i32) {
    %c0_i32 = arith.constant 0 : i32
    %c0_i32_0 = arith.constant 0 : i32
    %c0_i32_1 = arith.constant 0 : i32
    %c0_i32_2 = arith.constant 0 : i32
    return %c0_i32, %c0_i32_0, %c0_i32_1 : i32, i32, i32
  }
  func.func @transform_8(%arg0: i32) -> (i32, i32, i32) {
    %c0_i32 = arith.constant 0 : i32
    %c0_i32_0 = arith.constant 0 : i32
    %c0_i32_1 = arith.constant 0 : i32
    %c0_i32_2 = arith.constant 0 : i32
    return %c0_i32, %c0_i32_0, %c0_i32_1 : i32, i32, i32
  }
  func.func @transform_9(%arg0: i32) -> (i32, i32, i32) {
    %c0_i32 = arith.constant 0 : i32
    %c0_i32_0 = arith.constant 0 : i32
    %c0_i32_1 = arith.constant 0 : i32
    %c0_i32_2 = arith.constant 0 : i32
    return %c0_i32, %c0_i32_0, %c0_i32_1 : i32, i32, i32
  }
  func.func @transform_10(%arg0: i32) -> (i32, i32, i32) {
    %c0_i32 = arith.constant 0 : i32
    %c0_i32_0 = arith.constant 0 : i32
    %c0_i32_1 = arith.constant 0 : i32
    %c0_i32_2 = arith.constant 0 : i32
    return %c0_i32, %c0_i32_0, %c0_i32_1 : i32, i32, i32
  }
  func.func @transform_11(%arg0: i32) -> (i32, i32, i32) {
    %c0_i32 = arith.constant 0 : i32
    %c0_i32_0 = arith.constant 0 : i32
    %c0_i32_1 = arith.constant 0 : i32
    %c0_i32_2 = arith.constant 0 : i32
    return %c0_i32, %c0_i32_0, %c0_i32_1 : i32, i32, i32
  }
  func.func @transform_12(%arg0: i32) -> (i32, i32, i32) {
    %c0_i32 = arith.constant 0 : i32
    %c0_i32_0 = arith.constant 0 : i32
    %c0_i32_1 = arith.constant 0 : i32
    %c0_i32_2 = arith.constant 0 : i32
    return %c0_i32, %c0_i32_0, %c0_i32_1 : i32, i32, i32
  }
  func.func @transform_13(%arg0: i32) -> (i32, i32, i32) {
    %c0_i32 = arith.constant 0 : i32
    %c0_i32_0 = arith.constant 0 : i32
    %c0_i32_1 = arith.constant 0 : i32
    %c0_i32_2 = arith.constant 0 : i32
    return %c0_i32, %c0_i32_0, %c0_i32_1 : i32, i32, i32
  }
  func.func @transform_14(%arg0: i32) -> (i32, i32, i32) {
    %c0_i32 = arith.constant 0 : i32
    %c0_i32_0 = arith.constant 0 : i32
    %c0_i32_1 = arith.constant 0 : i32
    %c0_i32_2 = arith.constant 0 : i32
    return %c0_i32, %c0_i32_0, %c0_i32_1 : i32, i32, i32
  }
  func.func @transform_15(%arg0: i32) -> (i32, i32, i32) {
    %c0_i32 = arith.constant 0 : i32
    %c0_i32_0 = arith.constant 0 : i32
    %c0_i32_1 = arith.constant 0 : i32
    %c0_i32_2 = arith.constant 0 : i32
    return %c0_i32, %c0_i32_0, %c0_i32_1 : i32, i32, i32
  }
  func.func @transform_16(%arg0: i32) -> (i32, i32) {
    %c0_i32 = arith.constant 0 : i32
    %c0_i32_0 = arith.constant 0 : i32
    %c0_i32_1 = arith.constant 0 : i32
    return %c0_i32, %c0_i32_0 : i32, i32
  }
  func.func @transform_17(%arg0: i32) -> (i32, i32) {
    %c0_i32 = arith.constant 0 : i32
    %c0_i32_0 = arith.constant 0 : i32
    %c0_i32_1 = arith.constant 0 : i32
    return %c0_i32, %c0_i32_0 : i32, i32
  }
  func.func @transform_18(%arg0: i32) -> (i32, i32, i32) {
    %c0_i32 = arith.constant 0 : i32
    %c0_i32_0 = arith.constant 0 : i32
    %c0_i32_1 = arith.constant 0 : i32
    return %arg0, %c0_i32, %c0_i32_0 : i32, i32, i32
  }
}

</mosaic_0001>

<bundles_post_ra>
// kernel: bert_base_uncased_forward.1
= control target key start
LH: loop header
LB: loop body
LE: loop exit
PB: predicated region body
PF: predicated region fallthrough
CT: control target
= control target key end

     0   :  { %s3660_s0 = inlined_call_operand.vmem [shape: f32[2,8,32], index: 0, kind: input, shape index: {}]   ;;  %s3661_s1 = inlined_call_operand.vmem [shape: f32[2,1,8], index: 1, kind: input, shape index: {}]   ;;  %s3662_s2 = inlined_call_operand.vmem [shape: f32[1,32], index: 2, kind: input, shape index: {}]   ;;  %s3663_s3 = inlined_call_operand.vmem [shape: f32[1,32], index: 3, kind: input, shape index: {}]   ;;  %s3664_s4 = inlined_call_operand.vmem [shape: bf16[2,32,96], index: 4, kind: input, shape index: {}]   ;;  %s3665_s5 = inlined_call_operand.vmem [shape: f32[2,1,96], index: 5, kind: input, shape index: {}]   ;;  %s3666_s6 = inlined_call_operand.vmem [shape: bf16[2,32,32], index: 6, kind: input, shape index: {}]   ;;  %s3667_s7 = inlined_call_operand.vmem [shape: f32[2,1,32], index: 7, kind: input, shape index: {}]   ;;  %s3668_s8 = inlined_call_operand.vmem [shape: f32[2,1,32], index: 8, kind: input, shape index: {}]   ;;  %s3669_s9 = inlined_call_operand.vmem [shape: f32[2,1,32], index: 9, kind: input, shape index: {}]   ;;  %s3670_s10 = inlined_call_operand.vmem [shape: bf16[2,32,64], index: 10, kind: input, shape index: {}]   ;;  %s3671_s11 = inlined_call_operand.vmem [shape: f32[2,1,64], index: 11, kind: input, shape index: {}]   ;;  %s3672_s12 = inlined_call_operand.vmem [shape: bf16[2,64,32], index: 12, kind: input, shape index: {}]   ;;  %s3673_s13 = inlined_call_operand.vmem [shape: f32[2,1,32], index: 13, kind: input, shape index: {}]   ;;  %s3674_s14 = inlined_call_operand.vmem [shape: f32[2,1,32], index: 14, kind: input, shape index: {}]   ;;  %s3675_s15 = inlined_call_operand.vmem [shape: f32[2,1,32], index: 15, kind: input, shape index: {}]   ;;  %s3676_s16 = inlined_call_operand.vmem [shape: bf16[64,128], index: 16, kind: input, shape index: {}]   ;;  %s3677_s17 = inlined_call_operand.vmem [shape: f32[1,128], index: 17, kind: input, shape index: {}]   ;;  %s3678_s18 = inlined_call_operand.hbm [shape: f32[2,1,128], index: 18, kind: output, shape index: {}]  }
   0x1   :  { %3693 = sst [smem:[#allocation9_spill]] %s3660_s0 }
   0x2   :  { %3694 = sst [smem:[#allocation10_spill]] %s3661_s1 }
   0x3   :  { %3695 = sst [smem:[#allocation11_spill]] %s3662_s2 }
   0x4   :  { %3696 = sst [smem:[#allocation12_spill]] %s3663_s3 }
   0x5   :  { %3697 = sst [smem:[#allocation13_spill]] %s3664_s4 }
   0x6   :  { %3698 = sst [smem:[#allocation14_spill]] %s3665_s5 }
   0x7   :  { %23 = vsyncpa [#allocation5], 0 }
   0x8   :  { %25 = vsyncpa [#allocation5 + $0x1], 0  ;;  %s3176_s27 = smov 0   ;;  %s3178_s28 = smov 0  }
   0x9   :  { %s3180_s29 = smov 0   ;;  %s3182_s30 = smov 0  }
   0xa LB: > { %3699 = sst [smem:[#allocation7_spill]] %s3058_s29  ;;  %s3197_s0 = sadd.s32 4294967295, %s3062_s30   ;;  %s3062_s30 = sphi %s3182_s30, %s3726_s30   ;;  %s3058_s29 = sphi %s3180_s29, %s3723_s29   ;;  %s3054_s28 = sphi %s3178_s28, %s3725_s28   ;;  %s3050_s27 = sphi %s3176_s27, %s3724_s27  }
   0xb   : > { %s2515_s19 = sadd.s32 4294967294, %s3062_s30   ;;  %s3201_s1 = sadd.s32 1, %s3062_s30  }
   0xc   : > { %s426_s20 = sadd.s32 1, %s3058_s29  ;;  %s423_s21 = ssub.s32 %s3062_s30, %s3201_s1 }
   0xd   : > { %p436_p0 = scmp.ne.s32.totalorder %s3058_s29, %s3054_s28  ;;  %p424_p1 = scmp.eq.s32.totalorder %s423_s21, 0 }
   0xe   : > { %p437_p2 = scmp.eq.s32.totalorder %s3197_s0, 1  ;;  %p442_p3 = scmp.ne.s32.totalorder %s3054_s28, %s3050_s27 }
   0xf   : > { %p443_p4 = scmp.eq.s32.totalorder %s2515_s19, 1  ;;  %p2518_p7 = scmp.ge.s32.totalorder %s3062_s30, 1 }
  0x10   : > { %s3212_s22 = scalar_select %p424_p1, %s3058_s29, %s426_s20  }
  0x11   : > { %p3214_p5 = por %p437_p2, %p436_p0  ;;  %p3218_p6 = por %p443_p4, %p442_p3 }
  0x12   : > { %3700 = sst [smem:[#allocation8_spill]] %s3212_s22  ;;  %p522_p8 = scmp.lt.s32.totalorder %s3062_s30, 3 }
  0x14   : > { %p523_p9 = pnand %p2518_p7, %p522_p8 }
  0x15   : > { %p577_p10 = scmp.lt.s32.totalorder (!%p523_p9), %s3197_s0, 1  ;;  %vm589_vm0 = vcmask (!%p523_p9), 261120   ;;  %s3703_s20 = sld [smem:[#allocation9_spill]] (!%p523_p9)  ;;  %v3064_v8 = vmov (!%p523_p9), 0.0   ;;  %vm3065_vm1 = vmmov (!%p523_p9), 0   ;;  %vm685_vm2 = vcmask (!%p523_p9), 785408  }
  0x16   : > { %526 = sbr.rel (%p523_p9) target bundleno = 5770 (0x168a), region = 92  ;;  %s3704_s4 = sld [smem:[#allocation13_spill]] (!%p523_p9)  ;;  %2687 = vmatprep.subr.bf16.mxu0 (!%p523_p9), %v3064_v8  ;;  %2695 = vmatprep.subr.bf16.mxu1 (!%p523_p9), %v3064_v8  ;;  %vm692_vm3 = vcmask (!%p523_p9), 64512   ;;  %vm764_vm4 = vcmask (!%p523_p9), 1043456   ;;  %vm928_vm5 = vcmask (!%p523_p9), 130112   ;;  %vm1049_vm6 = vcmask (!%p523_p9), 195712  }
  0x17   : > { %2691 = vmatprep.mubr.msk.bf16.mxu0 (!%p523_p9), %vm3065_vm1, %v3064_v8  ;;  %2697 = vmatprep.mubr.msk.bf16.mxu1 (!%p523_p9), %vm3065_vm1, %v3064_v8  ;;  %s3705_s19 = sld [smem:[#allocation11_spill]] (!%p523_p9)  ;;  %s3706_s3 = sld [smem:[#allocation12_spill]] (!%p523_p9)  ;;  %vm1170_vm7 = vcmask (!%p523_p9), 261312   ;;  %vm1382_vm8 = vcmask (!%p523_p9), 523264  }
  0x18   : > { %s3707_s5 = sld [smem:[#allocation14_spill]] (!%p523_p9)  ;;  %s3688_s29 = smov (!%p523_p9), 120  }
  0x19   : > { %s3692_s22 = smov (!%p523_p9), 96   ;;  %s3680_s26 = smov (!%p523_p9), 104  }
  0x1c   : > { %v2926_v7 = vld [vmem:[%s3704_s4] sm:$0xff] (!%p523_p9)   ;;  %v2927_v9 = vld [vmem:[%s3704_s4 + $0x8] sm:$0xff] (!%p523_p9)  }
  0x1d   : > { %s3226_s24 = scalar_select %p577_p10, %s3197_s0, 1  ;;  %2688 = vmatpush3.bf16.msra.mxu0 %v2926_v7  ;;  %v2520_v14 = vld [vmem:[%s3705_s19] ss:$0 sm:$0xff] }
  0x1e   : > { %2689 = vmatprep.subr.bf16.mxu0 %v3064_v8  ;;  %v2521_v16 = vld [vmem:[%s3706_s3] ss:$0 sm:$0xff]  ;;  %s3068_s19 = smov 88  }
  0x1f   : > { %s2519_s25 = sshll.u32 %s3226_s24, 3  ;;  %v2522_v20 = vld [vmem:[%s3707_s5] ss:$0 sm:$0xff] }
  0x20   : > { %s580_s21 = scalar_lea.vmem %s3703_s20, %s2519_s25  ;;  %s3683_s20 = smov 80  }
  0x21   : > { %v586_v0 = vld [vmem:[%s580_s21] sm:$0xff]  ;;  %2690 = vmatpush3.bf16.msra.mxu0 %v2927_v9  ;;  %s3682_s21 = smov 112   ;;  %s3681_s25 = smov 72  }
  0x22   : > { %v590_v1 = vsel %vm589_vm0, %v586_v0, 0.0  ;;  %2701 = vmatprep.subr.bf16.mxu0 %v3064_v8 }
  0x23   : > { %591 = vadd.xlane.f32.xlu0 %v590_v1 }
  0xb0   : > { %v592_v2 = vpop.xlane.xlu0 %591 }
  0xb1   : > { %v594_v3 = vmul.f32 0.03125, %v592_v2 }
  0xb3   : > { %v595_v4 = vsub.f32 %v586_v0, %v594_v3 }
  0xb5   : > { %v596_v5 = vmul.f32 %v595_v4, %v595_v4 }
  0xb7   : > { %v597_v6 = vsel %vm589_vm0, %v596_v5, 0.0 }
  0xb8   : > { %598 = vadd.xlane.f32.xlu0 %v597_v6 }
 0x145   : > { %v599_v10 = vpop.xlane.xlu0 %598 }
 0x146   : > { %v600_v11 = vmul.f32 0.03125, %v599_v10 }
 0x148   : > { %v601_v12 = vadd.f32 1e-12, %v600_v11 }
 0x14a   : > { %2950 = vrsqrt.f32 %v601_v12 }
 0x154   : > { %v2951_v13 = vpop.eup %2950 }
 0x155   : > { %v603_v15 = vmul.f32 %v2951_v13, %v595_v4 }
 0x157   : > { %v610_v17 = vmul.f32 %v2520_v14, %v603_v15 }
 0x159   : > { %v3254_v18 = vadd.f32 %v2521_v16, %v610_v17 }
 0x15b   : > { %v622_v19 = vpack.c.bf16 %v3254_v18, %v3254_v18 }
 0x15d   : > { %2692 = vmatmul.mubr.msk.bf16.vlgmr.msra.gmra.mrb[0].mxu0 %vm589_vm0, %v622_v19 }
 0x15e   : > { %2703 = vmatprep.mubr.msk.bf16.mxu0 %vm3065_vm1, %v3064_v8 }
 0x230   : > { %v679_v21 = vpop.f32.mrb[0].mxu0 }
 0x231   : > { %v680_v22 = vadd.f32 %v2522_v20, %v679_v21  ;;  %v2693_v23 = vpop.f32.mrb[1].mxu0 }
 0x232   : > { %v682_v24 = vpop.f32.mrb[2].mxu0 }
 0x233   : > { %686 = vst.msk [vmem:[#allocation2] sm:$0xff] %vm685_vm2, %v680_v22  ;;  %v2694_v25 = vpop.f32.mrb[3].mxu0 }
 0x23a   : > { %v809_v26 = vld [vmem:[#allocation2] sm:$0xff] }
 0x23b   : > { %v3265_v27 = vpack.c.bf16 %v809_v26, %v809_v26 }
 0x23d   : > { %812 = vrot.lane.b32.xlu0 %v3265_v27, %s3688_s29  ;;  %690 = vrot.lane.b32.xlu1 %v3265_v27, %s3692_s22  ;;  %s3690_s29 = smov 16   ;;  %s3711_s22 = smov 80  }
 0x241   : > { %814 = vrot.lane.b32.xlu1 %v3265_v27, %s3068_s19 }
 0x245   : > { %935 = vrot.lane.b32.xlu1 %v3265_v27, %s3683_s20 }
 0x249   : > { %933 = vrot.lane.b32.xlu1 %v3265_v27, %s3682_s21  ;;  %s3708_s21 = sld [smem:[#allocation10_spill]] }
 0x24d   : > { %1056 = vrot.lane.b32.xlu1 %v3265_v27, %s3681_s25  ;;  %s3684_s25 = smov 40  }
 0x24f   : > { %s583_s20 = scalar_lea.vmem %s3708_s21, %s3226_s24  ;;  %s3687_s24 = smov 64  }
 0x250   : > { %v3306_v39 = vld [vmem:[%s583_s20] ss:$0 sm:$0xff]  ;;  %s3686_s20 = smov 56   ;;  %s3685_s21 = smov 48  }
 0x251   : > { %1054 = vrot.lane.b32.xlu1 %v3265_v27, %s3680_s26  ;;  %s3691_s26 = smov 8  }
 0x2af   : > { %v691_v28 = vpop.permute.xlu1 %690  ;;  %v813_v33 = vpop.permute.xlu0 %812 }
 0x2b0   : > { %v697_v29 = vsel %vm692_vm3, %v691_v28, 0 }
 0x2b1   : > { %2696 = vmatpush3.bf16.xpose.msra.mxu1 %v697_v29 }
 0x2b2   : > { %2707 = vmatprep.subr.bf16.mxu1 %v3064_v8 }
 0x2b3   : > { %v815_v30 = vpop.permute.xlu1 %814 }
 0x2b4   : > { %v820_v31 = vsel %vm692_vm3, %v815_v30, 0 }
 0x2b7   : > { %v936_v32 = vpop.permute.xlu1 %935 }
 0x2b8   : > { %2698 = vmatmul.mubr.msk.bf16.vlgmr.msra.gmra.mrb[0].mxu1 %vm692_vm3, %v3265_v27  ;;  %v941_v35 = vsel %vm692_vm3, %v936_v32, 0 }
 0x2b9   : > { %2708 = vmatpush3.bf16.xpose.msra.mxu1 %v820_v31  ;;  %2709 = vmatprep.mubr.msk.bf16.mxu1 %vm3065_vm1, %v3064_v8 }
 0x2ba   : > { %2719 = vmatprep.subr.bf16.mxu1 %v3064_v8 }
 0x2bb   : > { %v934_v34 = vpop.permute.xlu1 %933 }
 0x2bf   : > { %v1057_v36 = vpop.permute.xlu1 %1056 }
 0x2c0   : > { %2710 = vmatmul.mubr.msk.bf16.vlgmr.msra.gmra.mrb[4].mxu1 %vm692_vm3, %v813_v33  ;;  %v1062_v37 = vsel %vm692_vm3, %v1057_v36, 0 }
 0x2c1   : > { %2720 = vmatpush3.bf16.xpose.msra.mxu1 %v941_v35  ;;  %2721 = vmatprep.mubr.msk.bf16.mxu1 %vm3065_vm1, %v3064_v8 }
 0x2c2   : > { %2731 = vmatprep.subr.bf16.mxu1 %v3064_v8 }
 0x2c3   : > { %v1055_v38 = vpop.permute.xlu1 %1054 }
 0x2c8   : > { %2722 = vmatmul.mubr.msk.bf16.vlgmr.msra.gmra.mrb[8].mxu1 %vm692_vm3, %v934_v34 }
 0x2c9   : > { %2732 = vmatpush3.bf16.xpose.msra.mxu1 %v1062_v37  ;;  %2733 = vmatprep.mubr.msk.bf16.mxu1 %vm3065_vm1, %v3064_v8 }
 0x2ca   : > { %2743 = vmatprep.subr.bf16.mxu1 %v3064_v8 }
 0x2d0   : > { %2734 = vmatmul.mubr.msk.bf16.vlgmr.msra.gmra.mrb[12].mxu1 %vm692_vm3, %v1055_v38 }
 0x2d1   : > { %2747 = vmatprep.mubr.msk.bf16.mxu1 %vm3065_vm1, %v3064_v8 }
 0x38b   : > { %v733_v40 = vpop.f32.mrb[0].mxu1 }
 0x38c   : > { %v739_v41 = vmul.f32 0.35355338, %v733_v40  ;;  %v2699_v42 = vpop.f32.mrb[1].mxu1 }
 0x38d   : > { %v736_v43 = vpop.f32.mrb[2].mxu1 }
 0x38e   : > { %v2700_v44 = vpop.f32.mrb[3].mxu1  ;;  %v746_v45 = vadd.f32 %v3306_v39, %v739_v41 }
 0x390   : > { %v747_v46 = vsel %vm692_vm3, %v746_v45, -inf }
 0x391   : > { %748 = vmax.xlane.f32.xlu1 %v747_v46 }
 0x393   : > { %v856_v47 = vpop.f32.mrb[4].mxu1 }
 0x394   : > { %v862_v48 = vmul.f32 0.35355338, %v856_v47  ;;  %v2711_v49 = vpop.f32.mrb[5].mxu1 }
 0x395   : > { %v859_v50 = vpop.f32.mrb[6].mxu1 }
 0x396   : > { %v2712_v51 = vpop.f32.mrb[7].mxu1  ;;  %v863_v52 = vadd.f32 %v3306_v39, %v862_v48 }
 0x398   : > { %v864_v53 = vsel %vm692_vm3, %v863_v52, -inf }
 0x399   : > { %865 = vmax.xlane.f32.xlu0 %v864_v53 }
 0x39b   : > { %v977_v54 = vpop.f32.mrb[8].mxu1 }
 0x39c   : > { %v983_v55 = vmul.f32 0.35355338, %v977_v54  ;;  %v2723_v56 = vpop.f32.mrb[9].mxu1 }
 0x39d   : > { %v980_v57 = vpop.f32.mrb[10].mxu1 }
 0x39e   : > { %v2724_v58 = vpop.f32.mrb[11].mxu1  ;;  %v984_v59 = vadd.f32 %v3306_v39, %v983_v55 }
 0x3a0   : > { %v985_v60 = vsel %vm692_vm3, %v984_v59, -inf }
 0x3a1   : > { %986 = vmax.xlane.f32.xlu1 %v985_v60  ;;  %v2929_v60 = vld [vmem:[%s3666_s6 + $0x8] sm:$0xff]  }
 0x3a3   : > { %v1098_v61 = vpop.f32.mrb[12].mxu1 }
 0x3a4   : > { %v1104_v62 = vmul.f32 0.35355338, %v1098_v61  ;;  %v2735_v63 = vpop.f32.mrb[13].mxu1 }
 0x3a5   : > { %v1101_v0 = vpop.f32.mrb[14].mxu1 }
 0x3a6   : > { %v2736_v1 = vpop.f32.mrb[15].mxu1  ;;  %v1105_v2 = vadd.f32 %v3306_v39, %v1104_v62 }
 0x3a8   : > { %v1106_v3 = vsel %vm692_vm3, %v1105_v2, -inf }
 0x3a9   : > { %1107 = vmax.xlane.f32.xlu0 %v1106_v3 }
 0x41e   : > { %v749_v4 = vpop.xlane.xlu1 %748 }
 0x41f   : > { %v750_v5 = vsub.f32 %v746_v45, %v749_v4 }
 0x421   : > { %v751_v6 = vmul.f32 1.442695, %v750_v5 }
 0x423   : > { %2952 = vpow2.f32 %v751_v6 }
 0x426   : > { %v866_v7 = vpop.xlane.xlu0 %865 }
 0x427   : > { %v867_v9 = vsub.f32 %v863_v52, %v866_v7 }
 0x429   : > { %v868_v10 = vmul.f32 1.442695, %v867_v9 }
 0x42b   : > { %2954 = vpow2.f32 %v868_v10 }
 0x42d   : > { %v2953_v11 = vpop.eup %2952 }
 0x42e   : > { %v753_v12 = vsel %vm692_vm3, %v2953_v11, 0.0  ;;  %v987_v21 = vpop.xlane.xlu1 %986 }
 0x42f   : > { %754 = vadd.xlane.f32.xlu1 %v753_v12  ;;  %v988_v22 = vsub.f32 %v984_v59, %v987_v21  ;;  %v2928_v59 = vld [vmem:[%s3666_s6] sm:$0xff]  }
 0x430   : > { %2744 = vmatpush3.bf16.msra.mxu1 %v2928_v59 }
 0x431   : > { %v989_v23 = vmul.f32 1.442695, %v988_v22  ;;  %2745 = vmatprep.subr.bf16.mxu1 %v3064_v8 }
 0x434   : > { %2746 = vmatpush3.bf16.msra.mxu1 %v2929_v60 }
 0x435   : > { %v2955_v13 = vpop.eup %2954  ;;  %2759 = vmatprep.subr.bf16.mxu1 %v3064_v8 }
 0x436   : > { %v1108_v14 = vpop.xlane.xlu0 %1107  ;;  %v870_v15 = vsel %vm692_vm3, %v2955_v13, 0.0 }
 0x437   : > { %v1109_v16 = vsub.f32 %v1105_v2, %v1108_v14  ;;  %871 = vadd.xlane.f32.xlu0 %v870_v15 }
 0x439   : > { %v1110_v17 = vmul.f32 1.442695, %v1109_v16 }
 0x43b   : > { %2956 = vpow2.f32 %v1110_v17 }
 0x43c   : > { %2958 = vpow2.f32 %v989_v23 }
 0x440   : > { %759 = vrot.lane.b32.xlu1 %v3265_v27, %s3687_s24  ;;  %s3714_s24 = smov 104  }
 0x445   : > { %v2957_v19 = vpop.eup %2956 }
 0x446   : > { %v1112_v20 = vsel %vm692_vm3, %v2957_v19, 0.0  ;;  %v2959_v24 = vpop.eup %2958 }
 0x447   : > { %1113 = vadd.xlane.f32.xlu0 %v1112_v20  ;;  %v991_v25 = vsel %vm692_vm3, %v2959_v24, 0.0 }
 0x45d   : > { %876 = vrot.lane.b32.xlu0 %v3265_v27, %s3686_s20  ;;  %s3709_s20 = smov 96  }
 0x464   : > { %992 = vadd.xlane.f32.xlu1 %v991_v25  ;;  %v2930_v25 = vld [vmem:[%s3670_s10] sm:$0xff]  }
 0x475   : > { %997 = vrot.lane.b32.xlu1 %v3265_v27, %s3685_s21  ;;  %s3689_s21 = smov 24  }
 0x479   : > { %1118 = vrot.lane.b32.xlu1 %v3265_v27, %s3684_s25  ;;  %s3713_s25 = smov 72  }
 0x4bc   : > { %v755_v26 = vpop.xlane.xlu1 %754 }
 0x4bd   : > { %2960 = vrcp.f32 %v755_v26  ;;  %v2931_v26 = vld [vmem:[%s3670_s10 + $0x8] sm:$0xff]  }
 0x4c0   : > { %v760_v28 = vpop.permute.xlu1 %759 }
 0x4c1   : > { %v766_v29 = vsel %vm764_vm4, %v760_v28, 0 }
 0x4c2   : > { %2702 = vmatpush3.bf16.msra.mxu0 %v766_v29 }
 0x4c3   : > { %2713 = vmatprep.subr.bf16.mxu0 %v3064_v8 }
 0x4c4   : > { %v872_v31 = vpop.xlane.xlu0 %871 }
 0x4c5   : > { %2962 = vrcp.f32 %v872_v31  ;;  %v2539_v31 = vld [vmem:[%s3668_s8] ss:$0 sm:$0xff] }
 0x4c7   : > { %v2961_v30 = vpop.eup %2960 }
 0x4c8   : > { %v757_v32 = vmul.f32 %v2961_v30, %v2953_v11  ;;  %v2535_v11 = vld [vmem:[%s3667_s7] ss:$0 sm:$0xff] }
 0x4ca   : > { %v758_v33 = vpack.c.bf16 %v757_v32, %v757_v32 }
 0x4cc   : > { %2704 = vmatmul.mubr.msk.bf16.vlgmr.msra.gmra.mrb[4].mxu0 %vm692_vm3, %v758_v33  ;;  %v2540_v33 = vld [vmem:[%s3669_s9] ss:$0 sm:$0xff] }
 0x4cd   : > { %2715 = vmatprep.mubr.msk.bf16.mxu0 %vm3065_vm1, %v3064_v8 }
 0x4cf   : > { %v2963_v27 = vpop.eup %2962 }
 0x4d0   : > { %v874_v35 = vmul.f32 %v2963_v27, %v2955_v13 }
 0x4d2   : > { %v875_v38 = vpack.c.bf16 %v874_v35, %v874_v35 }
 0x4d4   : > { %v1114_v34 = vpop.xlane.xlu0 %1113 }
 0x4d8   : > { %v877_v36 = vpop.permute.xlu0 %876 }
 0x4d9   : > { %v882_v37 = vsel %vm764_vm4, %v877_v36, 0  ;;  %v2932_v36 = vld [vmem:[%s3672_s12] sm:$0xff]  }
 0x4da   : > { %2714 = vmatpush3.bf16.msra.mxu0 %v882_v37  ;;  %v2933_v37 = vld [vmem:[%s3672_s12 + $0x8] sm:$0xff]  }
 0x4db   : > { %2725 = vmatprep.subr.bf16.mxu0 %v3064_v8 }
 0x4dd   : > { %2716 = vmatmul.mubr.msk.bf16.vlgmr.msra.gmra.mrb[8].mxu0 %vm692_vm3, %v875_v38  ;;  %v2934_v38 = vld [vmem:[%s3672_s12 + $0x10] sm:$0xff]  }
 0x4de   : > { %2727 = vmatprep.mubr.msk.bf16.mxu0 %vm3065_vm1, %v3064_v8 }
 0x4f1   : > { %v993_v40 = vpop.xlane.xlu1 %992 }
 0x4f2   : > { %2964 = vrcp.f32 %v993_v40  ;;  %v2935_v40 = vld [vmem:[%s3672_s12 + $0x18] sm:$0xff]  }
 0x4f3   : > { %2966 = vrcp.f32 %v1114_v34 }
 0x4f5   : > { %v998_v41 = vpop.permute.xlu1 %997 }
 0x4f6   : > { %v1003_v42 = vsel %vm764_vm4, %v998_v41, 0  ;;  %v2541_v41 = vld [vmem:[%s3671_s11] ss:$0 sm:$0xff] }
 0x4f7   : > { %2726 = vmatpush3.bf16.msra.mxu0 %v1003_v42 }
 0x4f8   : > { %2737 = vmatprep.subr.bf16.mxu0 %v3064_v8 }
 0x4f9   : > { %v1119_v45 = vpop.permute.xlu1 %1118 }
 0x4fa   : > { %v1124_v48 = vsel %vm764_vm4, %v1119_v45, 0 }
 0x4fc   : > { %v2965_v43 = vpop.eup %2964 }
 0x4fd   : > { %v995_v44 = vmul.f32 %v2965_v43, %v2959_v24  ;;  %v2967_v47 = vpop.eup %2966 }
 0x4fe   : > { %v1116_v49 = vmul.f32 %v2967_v47, %v2957_v19 }
 0x4ff   : > { %v996_v46 = vpack.c.bf16 %v995_v44, %v995_v44 }
 0x500   : > { %v1117_v50 = vpack.c.bf16 %v1116_v49, %v1116_v49 }
 0x501   : > { %2728 = vmatmul.mubr.msk.bf16.vlgmr.msra.gmra.mrb[12].mxu0 %vm692_vm3, %v996_v46 }
 0x502   : > { %2738 = vmatpush3.bf16.msra.mxu0 %v1124_v48  ;;  %2739 = vmatprep.mubr.msk.bf16.mxu0 %vm3065_vm1, %v3064_v8 }
 0x503   : > { %2751 = vmatprep.subr.bf16.mxu0 %v3064_v8 }
 0x509   : > { %2740 = vmatmul.mubr.msk.bf16.vlgmr.msra.gmra.mrb[16].mxu0 %vm692_vm3, %v1117_v50 }
 0x50a   : > { %2755 = vmatprep.mubr.msk.bf16.mxu0 %vm3065_vm1, %v3064_v8  ;;  %2752 = vmatpush3.bf16.msra.mxu0 %v2930_v25 }
 0x50b   : > { %2753 = vmatprep.subr.bf16.mxu0 %v3064_v8 }
 0x50e   : > { %2754 = vmatpush3.bf16.msra.mxu0 %v2931_v26 }
 0x50f   : > { %2771 = vmatprep.subr.bf16.mxu0 %v3064_v8 }
 0x59f   : > { %v802_v51 = vpop.f32.mrb[4].mxu0 }
 0x5a0   : > { %808 = vst.msk [vmem:[#allocation3] sm:$0xff] %vm692_vm3, %v802_v51  ;;  %v2705_v52 = vpop.f32.mrb[5].mxu0 }
 0x5a1   : > { %v805_v53 = vpop.f32.mrb[6].mxu0 }
 0x5a2   : > { %v2706_v54 = vpop.f32.mrb[7].mxu0  ;;  %v2545_v53 = vld [vmem:[%s3673_s13] ss:$0 sm:$0xff] }
 0x5b0   : > { %v918_v55 = vpop.f32.mrb[8].mxu0 }
 0x5b1   : > { %925 = vrot.lane.b32.xlu0 %v918_v55, %s3691_s26  ;;  %v2717_v56 = vpop.f32.mrb[9].mxu0  ;;  %s3712_s26 = smov 112  }
 0x5b2   : > { %v921_v57 = vpop.f32.mrb[10].mxu0 }
 0x5b3   : > { %v2718_v58 = vpop.f32.mrb[11].mxu0 }
 0x5d4   : > { %v1039_v61 = vpop.f32.mrb[12].mxu0 }
 0x5d5   : > { %1046 = vrot.lane.b32.xlu1 %v1039_v61, %s3690_s29  ;;  %v2729_v62 = vpop.f32.mrb[13].mxu0  ;;  %s3710_s29 = smov 120  }
 0x5d6   : > { %v1042_v63 = vpop.f32.mrb[14].mxu0 }
 0x5d7   : > { %v2730_v0 = vpop.f32.mrb[15].mxu0 }
 0x5dc   : > { %v1160_v1 = vpop.f32.mrb[16].mxu0 }
 0x5dd   : > { %1167 = vrot.lane.b32.xlu0 %v1160_v1, %s3689_s21  ;;  %v2741_v2 = vpop.f32.mrb[17].mxu0  ;;  %s3716_s21 = smov 56  }
 0x5de   : > { %v1163_v3 = vpop.f32.mrb[18].mxu0  ;;  %v2936_v2 = vld [vmem:[%s3704_s4 + $0x10] sm:$0xff]  }
 0x5df   : > { %v2742_v4 = vpop.f32.mrb[19].mxu0  ;;  %v2937_v3 = vld [vmem:[%s3704_s4 + $0x18] sm:$0xff]  }
 0x623   : > { %v926_v5 = vpop.permute.xlu0 %925 }
 0x624   : > { %929 = vst.msk [vmem:[#allocation3] sm:$0xff] %vm928_vm5, %v926_v5 }
 0x647   : > { %v1047_v6 = vpop.permute.xlu1 %1046 }
 0x648   : > { %1050 = vst.msk [vmem:[#allocation3] sm:$0xff] %vm1049_vm6, %v1047_v6 }
 0x64f   : > { %v1168_v7 = vpop.permute.xlu0 %1167 }
 0x650   : > { %1171 = vst.msk [vmem:[#allocation3] sm:$0xff] %vm1170_vm7, %v1168_v7 }
 0x657   : > { %v1172_v9 = vld [vmem:[#allocation3] sm:$0xff] }
 0x658   : > { %v1177_v10 = vpack.c.bf16 %v1172_v9, %v1172_v9  ;;  %v2551_v9 = vld [vmem:[%s3674_s14] ss:$0 sm:$0xff] }
 0x65a   : > { %2748 = vmatmul.mubr.msk.bf16.vlgmr.msra.gmra.mrb[16].mxu1 %vm589_vm0, %v1177_v10 }
 0x65b   : > { %2767 = vmatprep.mubr.msk.bf16.mxu1 %vm3065_vm1, %v3064_v8  ;;  %2760 = vmatpush3.bf16.msra.mxu1 %v2932_v36 }
 0x65c   : > { %2761 = vmatprep.subr.bf16.mxu1 %v3064_v8 }
 0x65f   : > { %2762 = vmatpush3.bf16.msra.mxu1 %v2933_v37 }
 0x660   : > { %2763 = vmatprep.subr.bf16.mxu1 %v3064_v8 }
 0x663   : > { %2764 = vmatpush3.bf16.msra.mxu1 %v2934_v38 }
 0x664   : > { %2765 = vmatprep.subr.bf16.mxu1 %v3064_v8 }
 0x667   : > { %2766 = vmatpush3.bf16.msra.mxu1 %v2935_v40 }
 0x668   : > { %2785 = vmatprep.subr.bf16.mxu1 %v3064_v8 }
 0x72d   : > { %v1234_v12 = vpop.f32.mrb[16].mxu1 }
 0x72e   : > { %v1235_v13 = vadd.f32 %v2535_v11, %v1234_v12  ;;  %v2749_v14 = vpop.f32.mrb[17].mxu1  ;;  %v2552_v11 = vld [vmem:[%s3675_s15] ss:$0 sm:$0xff] }
 0x72f   : > { %v1237_v15 = vpop.f32.mrb[18].mxu1 }
 0x730   : > { %v2750_v16 = vpop.f32.mrb[19].mxu1  ;;  %v1240_v17 = vadd.f32 %v1235_v13, %v3254_v18  ;;  %v2558_v15 = vld [vmem:[%s3707_s5 + $0x1] ss:$0 sm:$0xff] }
 0x732   : > { %v1243_v19 = vsel %vm589_vm0, %v1240_v17, 0.0 }
 0x733   : > { %1244 = vadd.xlane.f32.xlu1 %v1243_v19 }
 0x7c0   : > { %v1245_v20 = vpop.xlane.xlu1 %1244 }
 0x7c1   : > { %v1246_v21 = vmul.f32 0.03125, %v1245_v20 }
 0x7c3   : > { %v1247_v22 = vsub.f32 %v1240_v17, %v1246_v21 }
 0x7c5   : > { %v1248_v23 = vmul.f32 %v1247_v22, %v1247_v22 }
 0x7c7   : > { %v1249_v24 = vsel %vm589_vm0, %v1248_v23, 0.0 }
 0x7c8   : > { %1250 = vadd.xlane.f32.xlu0 %v1249_v24 }
 0x855   : > { %v1251_v18 = vpop.xlane.xlu0 %1250 }
 0x856   : > { %v1252_v28 = vmul.f32 0.03125, %v1251_v18 }
 0x858   : > { %v1253_v29 = vadd.f32 1e-12, %v1252_v28 }
 0x85a   : > { %2968 = vrsqrt.f32 %v1253_v29 }
 0x864   : > { %v2969_v30 = vpop.eup %2968 }
 0x865   : > { %v1255_v32 = vmul.f32 %v2969_v30, %v1247_v22 }
 0x867   : > { %v1262_v27 = vmul.f32 %v2539_v31, %v1255_v32 }
 0x869   : > { %v1269_v34 = vadd.f32 %v2540_v33, %v1262_v27 }
 0x86b   : > { %v1274_v35 = vpack.c.bf16 %v1269_v34, %v1269_v34 }
 0x86d   : > { %2756 = vmatmul.mubr.msk.bf16.vlgmr.msra.gmra.mrb[20].mxu0 %vm589_vm0, %v1274_v35 }
 0x86e   : > { %2775 = vmatprep.mubr.msk.bf16.mxu0 %vm3065_vm1, %v3064_v8  ;;  %2772 = vmatpush3.bf16.msra.mxu0 %v2936_v2 }
 0x86f   : > { %2773 = vmatprep.subr.bf16.mxu0 %v3064_v8 }
 0x872   : > { %2774 = vmatpush3.bf16.msra.mxu0 %v2937_v3 }
 0x873   : > { %2779 = vmatprep.subr.bf16.mxu0 %v3064_v8 }
 0x940   : > { %v1331_v42 = vpop.f32.mrb[20].mxu0 }
 0x941   : > { %v1332_v43 = vadd.f32 %v2541_v41, %v1331_v42  ;;  %v2757_v44 = vpop.f32.mrb[21].mxu0 }
 0x942   : > { %v1334_v45 = vpop.f32.mrb[22].mxu0 }
 0x943   : > { %v1338_v46 = vmul.f32 0.70710677, %v1332_v43  ;;  %v2758_v47 = vpop.f32.mrb[23].mxu0  ;;  %v1337_v49 = vmul.f32 0.5, %v1332_v43 }
 0x945   : > { %2970 = verf.f32 %v1338_v46 }
 0x94f   : > { %v2971_v48 = vpop.eup %2970 }
 0x950   : > { %v1340_v50 = vadd.f32 1.0, %v2971_v48 }
 0x952   : > { %v1341_v51 = vmul.f32 %v1340_v50, %v1337_v49 }
 0x954   : > { %v1350_v52 = vpack.c.bf16 %v1341_v51, %v1341_v51 }
 0x956   : > { %2768 = vmatmul.mubr.msk.bf16.vlgmr.msra.gmra.mrb[20].mxu1 %vm1382_vm8, %v1350_v52 }
 0x957   : > { %2787 = vmatprep.mubr.msk.bf16.mxu1 %vm3065_vm1, %v3064_v8 }
 0xa29   : > { %v1420_v54 = vpop.f32.mrb[20].mxu1 }
 0xa2a   : > { %v1421_v55 = vadd.f32 %v2545_v53, %v1420_v54  ;;  %v2769_v56 = vpop.f32.mrb[21].mxu1 }
 0xa2b   : > { %v1423_v57 = vpop.f32.mrb[22].mxu1 }
 0xa2c   : > { %v2770_v58 = vpop.f32.mrb[23].mxu1  ;;  %v1426_v59 = vadd.f32 %v1421_v55, %v1269_v34 }
 0xa2e   : > { %v1429_v60 = vsel %vm589_vm0, %v1426_v59, 0.0 }
 0xa2f   : > { %1430 = vadd.xlane.f32.xlu0 %v1429_v60 }
 0xabc   : > { %v1431_v61 = vpop.xlane.xlu0 %1430 }
 0xabd   : > { %v1432_v62 = vmul.f32 0.03125, %v1431_v61 }
 0xabf   : > { %v1433_v63 = vsub.f32 %v1426_v59, %v1432_v62 }
 0xac1   : > { %v1434_v0 = vmul.f32 %v1433_v63, %v1433_v63 }
 0xac3   : > { %v1435_v1 = vsel %vm589_vm0, %v1434_v0, 0.0 }
 0xac4   : > { %1436 = vadd.xlane.f32.xlu1 %v1435_v1 }
 0xb51   : > { %v1437_v4 = vpop.xlane.xlu1 %1436 }
 0xb52   : > { %v1438_v5 = vmul.f32 0.03125, %v1437_v4 }
 0xb54   : > { %v1439_v6 = vadd.f32 1e-12, %v1438_v5 }
 0xb56   : > { %2972 = vrsqrt.f32 %v1439_v6 }
 0xb60   : > { %v2973_v7 = vpop.eup %2972 }
 0xb61   : > { %v1441_v10 = vmul.f32 %v2973_v7, %v1433_v63 }
 0xb63   : > { %v1448_v12 = vmul.f32 %v2551_v9, %v1441_v10 }
 0xb65   : > { %v3430_v13 = vadd.f32 %v2552_v11, %v1448_v12 }
 0xb67   : > { %v1461_v14 = vpack.c.bf16 %v3430_v13, %v3430_v13 }
 0xb69   : > { %2776 = vmatmul.mubr.msk.bf16.vlgmr.msra.gmra.mrb[24].mxu0 %vm589_vm0, %v1461_v14 }
 0xb6a   : > { %2781 = vmatprep.mubr.msk.bf16.mxu0 %vm3065_vm1, %v3064_v8 }
 0xc3c   : > { %v1519_v16 = vpop.f32.mrb[24].mxu0 }
 0xc3d   : > { %v1520_v17 = vadd.f32 %v2558_v15, %v1519_v16  ;;  %v2777_v19 = vpop.f32.mrb[25].mxu0 }
 0xc3e   : > { %v1522_v20 = vpop.f32.mrb[26].mxu0 }
 0xc3f   : > { %1525 = vst.msk [vmem:[#allocation2] sm:$0xff] %vm685_vm2, %v1520_v17  ;;  %v2778_v21 = vpop.f32.mrb[27].mxu0 }
 0xc46   : > { %v1640_v22 = vld [vmem:[#allocation2] sm:$0xff] }
 0xc47   : > { %v3441_v23 = vpack.c.bf16 %v1640_v22, %v1640_v22 }
 0xc49   : > { %1645 = vrot.lane.b32.xlu1 %v3441_v23, %s3068_s19  ;;  %1529 = vrot.lane.b32.xlu0 %v3441_v23, %s3709_s20  ;;  %s3715_s19 = smov 64   ;;  %s3717_s20 = smov 48  }
 0xc4d   : > { %1643 = vrot.lane.b32.xlu1 %v3441_v23, %s3710_s29  ;;  %1765 = vrot.lane.b32.xlu0 %v3441_v23, %s3711_s22  ;;  %s3718_s29 = smov 40   ;;  %s3719_s22 = smov 8  }
 0xc51   : > { %1763 = vrot.lane.b32.xlu1 %v3441_v23, %s3712_s26  ;;  %1885 = vrot.lane.b32.xlu0 %v3441_v23, %s3713_s25 }
 0xc55   : > { %1883 = vrot.lane.b32.xlu1 %v3441_v23, %s3714_s24  ;;  %s575_s24 = sand.u32 1, %s3054_s28  }
 0xc56   : > { %s2439_s25 = scalar_lea.sflag [#allocation5], %s575_s24 }
 0xcbb   : > { %v1530_v24 = vpop.permute.xlu0 %1529  ;;  %v1646_v26 = vpop.permute.xlu1 %1645 }
 0xcbc   : > { %v1535_v25 = vsel %vm692_vm3, %v1530_v24, 0  ;;  %v1651_v18 = vsel %vm692_vm3, %v1646_v26, 0 }
 0xcbd   : > { %2780 = vmatpush3.bf16.xpose.msra.mxu0 %v1535_v25 }
 0xcbe   : > { %2791 = vmatprep.subr.bf16.mxu0 %v3064_v8 }
 0xcbf   : > { %v1766_v28 = vpop.permute.xlu0 %1765  ;;  %v1644_v29 = vpop.permute.xlu1 %1643 }
 0xcc0   : > { %v1771_v30 = vsel %vm692_vm3, %v1766_v28, 0 }
 0xcc3   : > { %v1886_v31 = vpop.permute.xlu0 %1885  ;;  %v1764_v32 = vpop.permute.xlu1 %1763 }
 0xcc4   : > { %2782 = vmatmul.mubr.msk.bf16.vlgmr.msra.gmra.mrb[28].mxu0 %vm692_vm3, %v3441_v23  ;;  %v1891_v33 = vsel %vm692_vm3, %v1886_v31, 0 }
 0xcc5   : > { %2792 = vmatpush3.bf16.xpose.msra.mxu0 %v1651_v18  ;;  %2793 = vmatprep.mubr.msk.bf16.mxu0 %vm3065_vm1, %v3064_v8 }
 0xcc6   : > { %2803 = vmatprep.subr.bf16.mxu0 %v3064_v8 }
 0xcc7   : > { %v1884_v27 = vpop.permute.xlu1 %1883 }
 0xccc   : > { %2794 = vmatmul.mubr.msk.bf16.vlgmr.msra.gmra.mrb[32].mxu0 %vm692_vm3, %v1644_v29 }
 0xccd   : > { %2804 = vmatpush3.bf16.xpose.msra.mxu0 %v1771_v30  ;;  %2805 = vmatprep.mubr.msk.bf16.mxu0 %vm3065_vm1, %v3064_v8 }
 0xcce   : > { %2815 = vmatprep.subr.bf16.mxu0 %v3064_v8 }
 0xcd4   : > { %2806 = vmatmul.mubr.msk.bf16.vlgmr.msra.gmra.mrb[36].mxu0 %vm692_vm3, %v1764_v32 }
 0xcd5   : > { %2816 = vmatpush3.bf16.xpose.msra.mxu0 %v1891_v33  ;;  %2817 = vmatprep.mubr.msk.bf16.mxu0 %vm3065_vm1, %v3064_v8 }
 0xcd6   : > { %2827 = vmatprep.subr.bf16.mxu0 %v3064_v8 }
 0xcdc   : > { %2818 = vmatmul.mubr.msk.bf16.vlgmr.msra.gmra.mrb[40].mxu0 %vm692_vm3, %v1884_v27 }
 0xcdd   : > { %2831 = vmatprep.mubr.msk.bf16.mxu0 %vm3065_vm1, %v3064_v8 }
 0xd97   : > { %v1571_v34 = vpop.f32.mrb[28].mxu0 }
 0xd98   : > { %v1577_v35 = vmul.f32 0.35355338, %v1571_v34  ;;  %v2783_v36 = vpop.f32.mrb[29].mxu0 }
 0xd99   : > { %v1574_v37 = vpop.f32.mrb[30].mxu0 }
 0xd9a   : > { %v2784_v38 = vpop.f32.mrb[31].mxu0  ;;  %v1578_v40 = vadd.f32 %v3306_v39, %v1577_v35 }
 0xd9c   : > { %v1579_v41 = vsel %vm692_vm3, %v1578_v40, -inf }
 0xd9d   : > { %1580 = vmax.xlane.f32.xlu0 %v1579_v41 }
 0xd9f   : > { %v1687_v42 = vpop.f32.mrb[32].mxu0 }
 0xda0   : > { %v1693_v43 = vmul.f32 0.35355338, %v1687_v42  ;;  %v2795_v44 = vpop.f32.mrb[33].mxu0 }
 0xda1   : > { %v1690_v45 = vpop.f32.mrb[34].mxu0 }
 0xda2   : > { %v2796_v46 = vpop.f32.mrb[35].mxu0  ;;  %v1694_v47 = vadd.f32 %v3306_v39, %v1693_v43 }
 0xda4   : > { %v1695_v48 = vsel %vm692_vm3, %v1694_v47, -inf }
 0xda5   : > { %1696 = vmax.xlane.f32.xlu1 %v1695_v48 }
 0xda7   : > { %v1807_v49 = vpop.f32.mrb[36].mxu0 }
 0xda8   : > { %v1813_v50 = vmul.f32 0.35355338, %v1807_v49  ;;  %v2807_v51 = vpop.f32.mrb[37].mxu0 }
 0xda9   : > { %v1810_v52 = vpop.f32.mrb[38].mxu0 }
 0xdaa   : > { %v2808_v53 = vpop.f32.mrb[39].mxu0  ;;  %v1814_v54 = vadd.f32 %v3306_v39, %v1813_v50 }
 0xdab   : > { %v2938_v53 = vld [vmem:[%s3666_s6 + $0x10] sm:$0xff]  }
 0xdac   : > { %v1815_v55 = vsel %vm692_vm3, %v1814_v54, -inf  ;;  %2828 = vmatpush3.bf16.msra.mxu0 %v2938_v53 }
 0xdad   : > { %1816 = vmax.xlane.f32.xlu0 %v1815_v55  ;;  %2829 = vmatprep.subr.bf16.mxu0 %v3064_v8 }
 0xdaf   : > { %v1927_v56 = vpop.f32.mrb[40].mxu0 }
 0xdb0   : > { %v1933_v57 = vmul.f32 0.35355338, %v1927_v56  ;;  %v2819_v58 = vpop.f32.mrb[41].mxu0 }
 0xdb1   : > { %v1930_v59 = vpop.f32.mrb[42].mxu0 }
 0xdb2   : > { %v2820_v60 = vpop.f32.mrb[43].mxu0  ;;  %v1934_v61 = vadd.f32 %v3306_v39, %v1933_v57 }
 0xdb4   : > { %v1935_v62 = vsel %vm692_vm3, %v1934_v61, -inf }
 0xdb5   : > { %1936 = vmax.xlane.f32.xlu0 %v1935_v62 }
 0xe2a   : > { %v1581_v63 = vpop.xlane.xlu0 %1580 }
 0xe2b   : > { %v1582_v0 = vsub.f32 %v1578_v40, %v1581_v63 }
 0xe2d   : > { %v1583_v1 = vmul.f32 1.442695, %v1582_v0 }
 0xe2f   : > { %2974 = vpow2.f32 %v1583_v1 }
 0xe32   : > { %v1697_v2 = vpop.xlane.xlu1 %1696 }
 0xe33   : > { %v1698_v3 = vsub.f32 %v1694_v47, %v1697_v2 }
 0xe35   : > { %v1699_v4 = vmul.f32 1.442695, %v1698_v3 }
 0xe37   : > { %2976 = vpow2.f32 %v1699_v4  ;;  %v2575_v4 = vld [vmem:[%s3667_s7 + $0x1] ss:$0 sm:$0xff] }
 0xe39   : > { %v2975_v5 = vpop.eup %2974 }
 0xe3a   : > { %v1585_v6 = vsel %vm692_vm3, %v2975_v5, 0.0  ;;  %v1817_v7 = vpop.xlane.xlu0 %1816 }
 0xe3b   : > { %1586 = vadd.xlane.f32.xlu1 %v1585_v6  ;;  %v1818_v16 = vsub.f32 %v1814_v54, %v1817_v7  ;;  %v2939_v54 = vld [vmem:[%s3666_s6 + $0x18] sm:$0xff]  }
 0xe3c   : > { %2830 = vmatpush3.bf16.msra.mxu0 %v2939_v54 }
 0xe3d   : > { %v1819_v17 = vmul.f32 1.442695, %v1818_v16  ;;  %2843 = vmatprep.subr.bf16.mxu0 %v3064_v8 }
 0xe41   : > { %v2977_v9 = vpop.eup %2976 }
 0xe42   : > { %v1937_v10 = vpop.xlane.xlu0 %1936  ;;  %v1701_v39 = vsel %vm692_vm3, %v2977_v9, 0.0 }
 0xe43   : > { %v1938_v11 = vsub.f32 %v1934_v61, %v1937_v10  ;;  %1702 = vadd.xlane.f32.xlu0 %v1701_v39 }
 0xe45   : > { %v1939_v12 = vmul.f32 1.442695, %v1938_v11 }
 0xe47   : > { %2978 = vpow2.f32 %v1939_v12 }
 0xe48   : > { %2980 = vpow2.f32 %v1819_v17 }
 0xe4c   : > { %1591 = vrot.lane.b32.xlu1 %v3441_v23, %s3715_s19  ;;  %s2618_s19 = sshll.u32 %s3197_s0, 4  ;;  %s3080_s0 = smov [#allocation4]  }
 0xe4d   : > { %s3618_s26 = scalar_lea.hbm %s3678_s18, %s2618_s19  ;;  %s3004_s4 = sshll.u32 %s3080_s0, 4  ;;  %s3005_s4 = int_to_ptr.vmem [resolvable:$false] %s3004_s4 }
 0xe4e   : > { %s3006_s5 = scalar_lea.vmem %s3005_s4, 32 }
 0xe51   : > { %v2979_v14 = vpop.eup %2978 }
 0xe52   : > { %v1941_v15 = vsel %vm692_vm3, %v2979_v14, 0.0  ;;  %v2981_v19 = vpop.eup %2980 }
 0xe53   : > { %1942 = vadd.xlane.f32.xlu0 %v1941_v15  ;;  %v1821_v20 = vsel %vm692_vm3, %v2981_v19, 0.0 }
 0xe69   : > { %1707 = vrot.lane.b32.xlu0 %v3441_v23, %s3716_s21  ;;  %s3720_s21 = smov 16  }
 0xe70   : > { %1822 = vadd.xlane.f32.xlu1 %v1821_v20  ;;  %v2941_v20 = vld [vmem:[%s3670_s10 + $0x18] sm:$0xff]  }
 0xe81   : > { %1827 = vrot.lane.b32.xlu1 %v3441_v23, %s3717_s20  ;;  %s3721_s20 = smov 24  }
 0xe85   : > { %1947 = vrot.lane.b32.xlu1 %v3441_v23, %s3718_s29 }
 0xec8   : > { %v1587_v21 = vpop.xlane.xlu1 %1586 }
 0xec9   : > { %2982 = vrcp.f32 %v1587_v21 }
 0xecc   : > { %v1592_v22 = vpop.permute.xlu1 %1591 }
 0xecd   : > { %v1597_v24 = vsel %vm764_vm4, %v1592_v22, 0 }
 0xece   : > { %2786 = vmatpush3.bf16.msra.mxu1 %v1597_v24 }
 0xecf   : > { %2797 = vmatprep.subr.bf16.mxu1 %v3064_v8 }
 0xed0   : > { %v1703_v26 = vpop.xlane.xlu0 %1702 }
 0xed1   : > { %2984 = vrcp.f32 %v1703_v26 }
 0xed3   : > { %v2983_v25 = vpop.eup %2982 }
 0xed4   : > { %v1589_v18 = vmul.f32 %v2983_v25, %v2975_v5  ;;  %v2581_v25 = vld [vmem:[%s3668_s8 + $0x1] ss:$0 sm:$0xff] }
 0xed6   : > { %v1590_v28 = vpack.c.bf16 %v1589_v18, %v1589_v18  ;;  %v2582_v18 = vld [vmem:[%s3669_s9 + $0x1] ss:$0 sm:$0xff] }
 0xed8   : > { %2788 = vmatmul.mubr.msk.bf16.vlgmr.msra.gmra.mrb[24].mxu1 %vm692_vm3, %v1590_v28 }
 0xed9   : > { %2799 = vmatprep.mubr.msk.bf16.mxu1 %vm3065_vm1, %v3064_v8 }
 0xedb   : > { %v2985_v29 = vpop.eup %2984 }
 0xedc   : > { %v1705_v30 = vmul.f32 %v2985_v29, %v2977_v9 }
 0xede   : > { %v1706_v33 = vpack.c.bf16 %v1705_v30, %v1705_v30  ;;  %v2942_v30 = vld [vmem:[%s3672_s12 + $0x20] sm:$0xff]  }
 0xee0   : > { %v1943_v23 = vpop.xlane.xlu0 %1942 }
 0xee4   : > { %v1708_v31 = vpop.permute.xlu0 %1707 }
 0xee5   : > { %v1713_v32 = vsel %vm764_vm4, %v1708_v31, 0  ;;  %v2943_v31 = vld [vmem:[%s3672_s12 + $0x28] sm:$0xff]  }
 0xee6   : > { %2798 = vmatpush3.bf16.msra.mxu1 %v1713_v32  ;;  %v2944_v32 = vld [vmem:[%s3672_s12 + $0x30] sm:$0xff]  }
 0xee7   : > { %2809 = vmatprep.subr.bf16.mxu1 %v3064_v8 }
 0xee9   : > { %2800 = vmatmul.mubr.msk.bf16.vlgmr.msra.gmra.mrb[28].mxu1 %vm692_vm3, %v1706_v33  ;;  %v2945_v33 = vld [vmem:[%s3672_s12 + $0x38] sm:$0xff]  }
 0xeea   : > { %2811 = vmatprep.mubr.msk.bf16.mxu1 %vm3065_vm1, %v3064_v8 }
 0xefd   : > { %v1823_v27 = vpop.xlane.xlu1 %1822 }
 0xefe   : > { %2986 = vrcp.f32 %v1823_v27  ;;  %v2588_v27 = vld [vmem:[%s3671_s11 + $0x1] ss:$0 sm:$0xff] }
 0xeff   : > { %2988 = vrcp.f32 %v1943_v23 }
 0xf01   : > { %v1828_v34 = vpop.permute.xlu1 %1827 }
 0xf02   : > { %v1833_v35 = vsel %vm764_vm4, %v1828_v34, 0 }
 0xf03   : > { %2810 = vmatpush3.bf16.msra.mxu1 %v1833_v35 }
 0xf04   : > { %2821 = vmatprep.subr.bf16.mxu1 %v3064_v8 }
 0xf05   : > { %v1948_v38 = vpop.permute.xlu1 %1947 }
 0xf06   : > { %v1953_v42 = vsel %vm764_vm4, %v1948_v38, 0 }
 0xf08   : > { %v2987_v36 = vpop.eup %2986 }
 0xf09   : > { %v1825_v37 = vmul.f32 %v2987_v36, %v2981_v19  ;;  %v2989_v41 = vpop.eup %2988  ;;  %v2940_v19 = vld [vmem:[%s3670_s10 + $0x10] sm:$0xff]  }
 0xf0a   : > { %v1945_v43 = vmul.f32 %v2989_v41, %v2979_v14 }
 0xf0b   : > { %v1826_v40 = vpack.c.bf16 %v1825_v37, %v1825_v37 }
 0xf0c   : > { %v1946_v44 = vpack.c.bf16 %v1945_v43, %v1945_v43 }
 0xf0d   : > { %2812 = vmatmul.mubr.msk.bf16.vlgmr.msra.gmra.mrb[32].mxu1 %vm692_vm3, %v1826_v40 }
 0xf0e   : > { %2822 = vmatpush3.bf16.msra.mxu1 %v1953_v42  ;;  %2823 = vmatprep.mubr.msk.bf16.mxu1 %vm3065_vm1, %v3064_v8 }
 0xf0f   : > { %2835 = vmatprep.subr.bf16.mxu1 %v3064_v8 }
 0xf15   : > { %2824 = vmatmul.mubr.msk.bf16.vlgmr.msra.gmra.mrb[36].mxu1 %vm692_vm3, %v1946_v44 }
 0xf16   : > { %2839 = vmatprep.mubr.msk.bf16.mxu1 %vm3065_vm1, %v3064_v8  ;;  %2836 = vmatpush3.bf16.msra.mxu1 %v2940_v19 }
 0xf17   : > { %2837 = vmatprep.subr.bf16.mxu1 %v3064_v8 }
 0xf1a   : > { %2838 = vmatpush3.bf16.msra.mxu1 %v2941_v20 }
 0xf1b   : > { %2855 = vmatprep.subr.bf16.mxu1 %v3064_v8 }
 0xfab   : > { %v1633_v45 = vpop.f32.mrb[24].mxu1 }
 0xfac   : > { %1639 = vst.msk [vmem:[#allocation3] sm:$0xff] %vm692_vm3, %v1633_v45  ;;  %v2789_v46 = vpop.f32.mrb[25].mxu1 }
 0xfad   : > { %v1636_v47 = vpop.f32.mrb[26].mxu1  ;;  %v2601_v46 = vld [vmem:[%s3673_s13 + $0x1] ss:$0 sm:$0xff] }
 0xfae   : > { %v2790_v48 = vpop.f32.mrb[27].mxu1 }
 0xfbc   : > { %v1749_v49 = vpop.f32.mrb[28].mxu1 }
 0xfbd   : > { %1756 = vrot.lane.b32.xlu0 %v1749_v49, %s3719_s22  ;;  %v2801_v50 = vpop.f32.mrb[29].mxu1 }
 0xfbe   : > { %v1752_v51 = vpop.f32.mrb[30].mxu1 }
 0xfbf   : > { %v2802_v52 = vpop.f32.mrb[31].mxu1 }
 0xfe0   : > { %v1869_v55 = vpop.f32.mrb[32].mxu1 }
 0xfe1   : > { %1876 = vrot.lane.b32.xlu1 %v1869_v55, %s3720_s21  ;;  %v2813_v56 = vpop.f32.mrb[33].mxu1  ;;  %s576_s21 = scalar_lea.vmem [#allocation4], %s575_s24 }
 0xfe2   : > { %v1872_v57 = vpop.f32.mrb[34].mxu1 }
 0xfe3   : > { %v2814_v58 = vpop.f32.mrb[35].mxu1 }
 0xfe8   : > { %v1989_v59 = vpop.f32.mrb[36].mxu1 }
 0xfe9   : > { %1996 = vrot.lane.b32.xlu0 %v1989_v59, %s3721_s20  ;;  %v2825_v60 = vpop.f32.mrb[37].mxu1  ;;  %v2946_v59 = vld [vmem:[%s3676_s16 + $0x10] sm:$0xff]   ;;  %s2451_s20 = sshll.u32 %s576_s21, 4  ;;  %s3620_s20 = int_to_ptr.vmem [resolvable:$true] %s2451_s20 }
 0xfea   : > { %v1992_v61 = vpop.f32.mrb[38].mxu1  ;;  %v2947_v60 = vld [vmem:[%s3676_s16 + $0x18] sm:$0xff]   ;;  %s3000_s3 = scalar_lea.vmem %s3620_s20, 16  ;;  %p3007_p0 = scmp.lt.s32.totalorder %s3620_s20, %s3005_s4 }
 0xfeb   : > { %v2826_v62 = vpop.f32.mrb[39].mxu1  ;;  %p3001_p11 = scmp.ne.s32.totalorder %s3620_s20, %s3000_s3  ;;  %p3008_p1 = scmp.lt.s32.totalorder %s3006_s5, %s3000_s3 }
 0xfed   : > { %p3002_p12 = pnand %p3001_p11, %p3214_p5  ;;  %p3009_p2 = por %p3008_p1, %p3007_p0 }
 0xfef   : > { %p3003_p13 = pneg %p3002_p12 }
 0xff1   : > { %p3010_p3 = pnand %p3009_p2, %p3003_p13 }
0x102f   : > { %v1757_v63 = vpop.permute.xlu0 %1756 }
0x1030   : > { %1759 = vst.msk [vmem:[#allocation3] sm:$0xff] %vm928_vm5, %v1757_v63 }
0x1053   : > { %v1877_v0 = vpop.permute.xlu1 %1876 }
0x1054   : > { %1879 = vst.msk [vmem:[#allocation3] sm:$0xff] %vm1049_vm6, %v1877_v0 }
0x105b   : > { %v1997_v1 = vpop.permute.xlu0 %1996 }
0x105c   : > { %1999 = vst.msk [vmem:[#allocation3] sm:$0xff] %vm1170_vm7, %v1997_v1  ;;  %v2609_v1 = vld [vmem:[%s3674_s14 + $0x1] ss:$0 sm:$0xff] }
0x1063   : > { %v2000_v2 = vld [vmem:[#allocation3] sm:$0xff] }
0x1064   : > { %v2006_v3 = vpack.c.bf16 %v2000_v2, %v2000_v2 }
0x1066   : > { %2832 = vmatmul.mubr.msk.bf16.vlgmr.msra.gmra.mrb[44].mxu0 %vm589_vm0, %v2006_v3  ;;  %v2610_v3 = vld [vmem:[%s3675_s15 + $0x1] ss:$0 sm:$0xff] }
0x1067   : > { %2851 = vmatprep.mubr.msk.bf16.mxu0 %vm3065_vm1, %v3064_v8  ;;  %2844 = vmatpush3.bf16.msra.mxu0 %v2942_v30 }
0x1068   : > { %2845 = vmatprep.subr.bf16.mxu0 %v3064_v8 }
0x106b   : > { %2846 = vmatpush3.bf16.msra.mxu0 %v2943_v31  ;;  %v2429_v31 = vld [vmem:[%s3677_s17] sm:$0x1] }
0x106c   : > { %2847 = vmatprep.subr.bf16.mxu0 %v3064_v8 }
0x106f   : > { %2848 = vmatpush3.bf16.msra.mxu0 %v2944_v32 }
0x1070   : > { %2849 = vmatprep.subr.bf16.mxu0 %v3064_v8 }
0x1073   : > { %2850 = vmatpush3.bf16.msra.mxu0 %v2945_v33 }
0x1139   : > { %v2064_v5 = vpop.f32.mrb[44].mxu0 }
0x113a   : > { %v2065_v6 = vadd.f32 %v2575_v4, %v2064_v5  ;;  %v2833_v7 = vpop.f32.mrb[45].mxu0 }
0x113b   : > { %v2067_v9 = vpop.f32.mrb[46].mxu0 }
0x113c   : > { %v2834_v10 = vpop.f32.mrb[47].mxu0  ;;  %v2070_v39 = vadd.f32 %v2065_v6, %v3430_v13 }
0x113e   : > { %v2075_v11 = vsel %vm589_vm0, %v2070_v39, 0.0 }
0x113f   : > { %2076 = vadd.xlane.f32.xlu1 %v2075_v11 }
0x11cc   : > { %v2077_v12 = vpop.xlane.xlu1 %2076 }
0x11cd   : > { %v2078_v14 = vmul.f32 0.03125, %v2077_v12 }
0x11cf   : > { %v2079_v15 = vsub.f32 %v2070_v39, %v2078_v14 }
0x11d1   : > { %v2080_v16 = vmul.f32 %v2079_v15, %v2079_v15 }
0x11d3   : > { %v2081_v17 = vsel %vm589_vm0, %v2080_v16, 0.0 }
0x11d4   : > { %2082 = vadd.xlane.f32.xlu0 %v2081_v17 }
0x1261   : > { %v2083_v13 = vpop.xlane.xlu0 %2082 }
0x1262   : > { %v2084_v21 = vmul.f32 0.03125, %v2083_v13  ;;  %v2948_v13 = vld [vmem:[%s3676_s16] sm:$0xff]  }
0x1264   : > { %v2085_v22 = vadd.f32 1e-12, %v2084_v21 }
0x1266   : > { %2990 = vrsqrt.f32 %v2085_v22 }
0x1270   : > { %v2991_v24 = vpop.eup %2990 }
0x1271   : > { %v2087_v26 = vmul.f32 %v2991_v24, %v2079_v15  ;;  %v2949_v24 = vld [vmem:[%s3676_s16 + $0x8] sm:$0xff]  }
0x1273   : > { %v2094_v28 = vmul.f32 %v2581_v25, %v2087_v26 }
0x1275   : > { %v2101_v29 = vadd.f32 %v2582_v18, %v2094_v28 }
0x1277   : > { %v2107_v23 = vpack.c.bf16 %v2101_v29, %v2101_v29 }
0x1279   : > { %2840 = vmatmul.mubr.msk.bf16.vlgmr.msra.gmra.mrb[40].mxu1 %vm589_vm0, %v2107_v23 }
0x127a   : > { %2859 = vmatprep.mubr.msk.bf16.mxu1 %vm3065_vm1, %v3064_v8  ;;  %2856 = vmatpush3.bf16.msra.mxu1 %v2946_v59 }
0x127b   : > { %2857 = vmatprep.subr.bf16.mxu1 %v3064_v8 }
0x127e   : > { %2858 = vmatpush3.bf16.msra.mxu1 %v2947_v60 }
0x127f   : > { %2863 = vmatprep.subr.bf16.mxu1 %v3064_v8 }
0x134c   : > { %v2165_v34 = vpop.f32.mrb[40].mxu1 }
0x134d   : > { %v2166_v35 = vadd.f32 %v2588_v27, %v2165_v34  ;;  %v2841_v36 = vpop.f32.mrb[41].mxu1 }
0x134e   : > { %v2168_v37 = vpop.f32.mrb[42].mxu1 }
0x134f   : > { %v2172_v38 = vmul.f32 0.70710677, %v2166_v35  ;;  %v2842_v40 = vpop.f32.mrb[43].mxu1  ;;  %v2171_v42 = vmul.f32 0.5, %v2166_v35 }
0x1351   : > { %2992 = verf.f32 %v2172_v38 }
0x135b   : > { %v2993_v41 = vpop.eup %2992 }
0x135c   : > { %v2174_v43 = vadd.f32 1.0, %v2993_v41 }
0x135e   : > { %v2175_v44 = vmul.f32 %v2174_v43, %v2171_v42 }
0x1360   : > { %v2185_v45 = vpack.c.bf16 %v2175_v44, %v2175_v44 }
0x1362   : > { %2852 = vmatmul.mubr.msk.bf16.vlgmr.msra.gmra.mrb[48].mxu0 %vm1382_vm8, %v2185_v45 }
0x1435   : > { %v2255_v47 = vpop.f32.mrb[48].mxu0 }
0x1436   : > { %v2256_v48 = vadd.f32 %v2601_v46, %v2255_v47  ;;  %v2853_v49 = vpop.f32.mrb[49].mxu0 }
0x1437   : > { %v2258_v50 = vpop.f32.mrb[50].mxu0 }
0x1438   : > { %v2854_v51 = vpop.f32.mrb[51].mxu0  ;;  %v2261_v52 = vadd.f32 %v2256_v48, %v2101_v29 }
0x143a   : > { %v2266_v53 = vsel %vm589_vm0, %v2261_v52, 0.0 }
0x143b   : > { %2267 = vadd.xlane.f32.xlu0 %v2266_v53 }
0x14c8   : > { %v2268_v54 = vpop.xlane.xlu0 %2267 }
0x14c9   : > { %v2269_v55 = vmul.f32 0.03125, %v2268_v54 }
0x14cb   : > { %v2270_v56 = vsub.f32 %v2261_v52, %v2269_v55 }
0x14cd   : > { %v2271_v57 = vmul.f32 %v2270_v56, %v2270_v56 }
0x14cf   : > { %v2272_v58 = vsel %vm589_vm0, %v2271_v57, 0.0 }
0x14d0   : > { %2273 = vadd.xlane.f32.xlu1 %v2272_v58 }
0x155d   : > { %v2274_v61 = vpop.xlane.xlu1 %2273 }
0x155e   : > { %v2275_v62 = vmul.f32 0.03125, %v2274_v61 }
0x1560   : > { %v2276_v63 = vadd.f32 1e-12, %v2275_v62 }
0x1562   : > { %2994 = vrsqrt.f32 %v2276_v63 }
0x156c   : > { %v2995_v0 = vpop.eup %2994 }
0x156d   : > { %v2278_v2 = vmul.f32 %v2995_v0, %v2270_v56 }
0x156f   : > { %v2285_v4 = vmul.f32 %v2609_v1, %v2278_v2 }
0x1571   : > { %v2292_v5 = vadd.f32 %v2610_v3, %v2285_v4 }
0x1573   : > { %v2293_v6 = vsel %vm589_vm0, %v2292_v5, 0.0  ;;  %v2302_v7 = vsel %vm589_vm0, %v2292_v5, -inf }
0x1574   : > { %v2294_v9 = vrot.slane %v2293_v6, 4  ;;  %v2303_v10 = vrot.slane %v2302_v7, 4 }
0x1576   : > { %v2304_v39 = vmax.f32 %v2302_v7, %v2303_v10  ;;  %v2295_v11 = vadd.f32 %v2294_v9, %v2293_v6 }
0x1578   : > { %v2305_v12 = vrot.slane %v2304_v39, 2  ;;  %v2296_v14 = vrot.slane %v2295_v11, 2 }
0x157a   : > { %v2306_v15 = vmax.f32 %v2304_v39, %v2305_v12  ;;  %v2297_v16 = vadd.f32 %v2296_v14, %v2295_v11 }
0x157c   : > { %v2307_v17 = vrot.slane %v2306_v15, 1  ;;  %v2298_v19 = vrot.slane %v2297_v16, 1 }
0x157e   : > { %v2308_v20 = vmax.f32 %v2306_v15, %v2307_v17  ;;  %v2299_v22 = vadd.f32 %v2298_v19, %v2297_v16 }
0x1580   : > { %v2318_v21 = vpack.c.bf16 %v2308_v20, %v2308_v20  ;;  %v2301_v25 = vmul.f32 0.125, %v2299_v22 }
0x1582   : > { %2860 = vmatmul.mubr.msk.bf16.vlgmr.msra.gmra.mrb[44].mxu1 %vm589_vm0, %v2318_v21  ;;  %v2313_v26 = vpack.c.bf16 %v2301_v25, %v2301_v25 }
0x1583   : > { %2864 = vmatpush3.bf16.msra.mxu1 %v2948_v13  ;;  %2867 = vmatprep.mubr.msk.bf16.mxu1 %vm3065_vm1, %v3064_v8 }
0x1584   : > { %2865 = vmatprep.subr.bf16.mxu1 %v3064_v8 }
0x1587   : > { %2866 = vmatpush3.bf16.msra.mxu1 %v2949_v24 }
0x158a   : > { %2868 = vmatmul.mubr.msk.bf16.vlgmr.msra.gmra.mrb[48].mxu1 %vm589_vm0, %v2313_v26 }
0x1655   : > { %v2368_v18 = vpop.f32.mrb[44].mxu1 }
0x1656   : > { %v2861_v28 = vpop.f32.mrb[45].mxu1 }
0x1657   : > { %v2371_v29 = vpop.f32.mrb[46].mxu1 }
0x1658   : > { %v2862_v23 = vpop.f32.mrb[47].mxu1 }
0x165d   : > { %v2423_v30 = vpop.f32.mrb[48].mxu1 }
0x165e   : > { %v2424_v32 = vadd.f32 %v2423_v30, %v2368_v18  ;;  %v2869_v33 = vpop.f32.mrb[49].mxu1 }
0x165f   : > { %v2426_v27 = vpop.f32.mrb[50].mxu1 }
0x1660   : > { %v2430_v8 = vadd.f32 %v2429_v31, %v2424_v32  ;;  %v2870_v34 = vpop.f32.mrb[51].mxu1 }
0x1662   : > { %v2617_v35 = vmul.f32 -1.442695, %v2430_v8 }
0x1664   : > { %2996 = vpow2.f32 %v2617_v35 }
0x166e   : > { %v2997_v36 = vpop.eup %2996 }
0x166f   : > { %v2434_v37 = vadd.f32 1.0, %v2997_v36 }
0x1671   : > { %2998 = vrcp.f32 %v2434_v37 }
0x167b   : > { %v2999_v38 = vpop.eup %2998 }
0x167c   : > { %2437 = vst [vmem:[%s576_s21] sm:$0x1] %v2999_v38 }
0x167d   : > { %3013 = shalt.err (!%p3010_p3)
}
0x167e   : > { %s3014_s24 = scalar_lea.hbm %s3618_s26, 16  ;;  %s3018_s29 = scalar_lea.hbm %s3678_s18, 32 }
0x167f   : > { %p3015_p4 = scmp.ne.s32.totalorder %s3618_s26, %s3014_s24  ;;  %p3019_p9 = scmp.lt.u32.totalorder %s3618_s26, %s3678_s18 }
0x1680   : > { %p3020_p10 = scmp.lt.u32.totalorder %s3018_s29, %s3014_s24  ;;  %p3022_p12 = scmp.lt.u32.totalorder %s3014_s24, %s3618_s26 }
0x1681   : > { %p3016_p7 = pnand %p3015_p4, %p3214_p5 }
0x1682   : > { %p3021_p11 = por %p3020_p10, %p3019_p9 }
0x1683   : > { %p3017_p8 = pneg %p3016_p7 }
0x1684   : > { %p3023_p13 = por %p3022_p12, %p3021_p11 }
0x1686   : > { %p3024_p0 = pnand %p3023_p13, %p3017_p8 }
0x1688   : > { %3027 = shalt.err (!%p3024_p0)
}
0x1689   : > { %2871 = dma.vmem_to_hbm [thread:$0]  (%p3214_p5), %s3620_s20, 16, %s3618_s26, %s2439_s25  }
0x168a PF: > { %p2877_p1 = scmp.ge.s32.totalorder %s3062_s30, 2  ;;  %s2463_s3 = sand.u32 1, %s3050_s27  }
0x168b   : > { %s2464_s5 = scalar_lea.sflag [#allocation5], %s2463_s3 }
0x168c   : > { %p2874_p2 = pnand %p2877_p1, %p3218_p6 }
0x168e   : > { %3045 = dma.done.wait (!%p2874_p2), %s2464_s5, 16  }
0x168f   : > { %3047 = vsyncadd (!%p2874_p2), %s2464_s5, 4294967280  ;;  %s3722_s0 = sld [smem:[#allocation7_spill]]  ;;  %s3723_s29 = sld [smem:[#allocation8_spill]] }
0x1690   : > { %p28_p3 = scmp.ge.s32.totalorder %s3201_s1, 4   ;;  %s3724_s27 = smov %s3054_s28 }
0x1691   : > { %s3726_s30 = smov %s3201_s1 }
0x1692   :  { %30 = sbr.rel (!%p28_p3) target bundleno = 10 (0xa), region = 142 }
0x1695   : > { %s3725_s28 = smov %s3722_s0 }
0x1699   :  { %2468 = vsyncpa [#allocation5], 1 }
0x169a   :  { %2470 = vsyncpa [#allocation5 + $0x1], 1 }

</bundles_post_ra>
